<compile_context>
chip_gen: v6e
topology: v6e:2x2x1
jax: 0.10.0
libtpu: 0.0.40
codegen_flags: <defaults>
</compile_context>

<pallas_src>
import functools
import math

import jax
import jax.numpy as jnp
from jax import lax
from jax.experimental import pallas as pl
from jax.experimental.pallas import tpu as pltpu


def _pick_tile(dim, target, align):
    """Largest `align`-multiple divisor of `dim` that is <= target (or full dim)."""
    if dim <= target:
        return dim
    t = (target // align) * align
    while t >= align:
        if dim % t == 0:
            return t
        t -= align
    return dim  # no aligned divisor found: fall back to one full block


# ----------------------------------------------------------------------------
# Kernel 1: tiled dense projection  y = x @ w  (w = transposed Linear weight)
# ----------------------------------------------------------------------------
def _matmul_kernel(x_ref, w_ref, o_ref, acc_ref):
    @pl.when(pl.program_id(2) == 0)
    def _():
        acc_ref[...] = jnp.zeros_like(acc_ref)

    acc_ref[...] += jnp.dot(x_ref[...], w_ref[...],
                            preferred_element_type=jnp.float32)

    @pl.when(pl.program_id(2) == pl.num_programs(2) - 1)
    def _():
        o_ref[...] = acc_ref[...].astype(o_ref.dtype)


def pallas_matmul(x, w, *, tm=256, tn=512, tk=512):
    M, K = x.shape
    K2, N = w.shape
    assert K == K2
    tm = _pick_tile(M, tm, 8)
    tn = _pick_tile(N, tn, 128)
    tk = _pick_tile(K, tk, 128)
    grid = (M // tm, N // tn, K // tk)
    itemsize = jnp.dtype(x.dtype).itemsize
    cost = pl.CostEstimate(
        flops=2 * M * N * K,
        transcendentals=0,
        bytes_accessed=(M * K + K * N + M * N) * itemsize,
    )
    return pl.pallas_call(
        _matmul_kernel,
        out_shape=jax.ShapeDtypeStruct((M, N), x.dtype),
        grid_spec=pltpu.PrefetchScalarGridSpec(
            num_scalar_prefetch=0,
            grid=grid,
            in_specs=[
                pl.BlockSpec((tm, tk), lambda i, j, k: (i, k)),
                pl.BlockSpec((tk, tn), lambda i, j, k: (k, j)),
            ],
            out_specs=pl.BlockSpec((tm, tn), lambda i, j, k: (i, j)),
            scratch_shapes=[pltpu.VMEM((tm, tn), jnp.float32)],
        ),
        compiler_params=pltpu.CompilerParams(
            dimension_semantics=("parallel", "parallel", "arbitrary")),
        cost_estimate=cost,
    )(x, w)


# ----------------------------------------------------------------------------
# Kernel 2: flash attention (online softmax), heads sliced via the index_map
# ----------------------------------------------------------------------------
def _flash_kernel(q_ref, k_ref, v_ref, o_ref, m_sc, l_sc, acc_sc, *,
                  approx_reciprocal):
    ki = pl.program_id(3)

    @pl.when(ki == 0)
    def _():
        m_sc[...] = jnp.full_like(m_sc, -jnp.inf)
        l_sc[...] = jnp.zeros_like(l_sc)
        acc_sc[...] = jnp.zeros_like(acc_sc)

    q = q_ref[0]  # (tq, d_k); 1/sqrt(d_k) already folded into the wq weight
    k = k_ref[0]  # (tk, d_k)
    v = v_ref[0]  # (tk, d_k)

    # Contraction over the last dim of both operands -> no in-kernel transpose.
    s = lax.dot_general(q, k, (((1,), (1,)), ((), ())),
                        preferred_element_type=jnp.float32)  # (tq, tk)

    m_prev = m_sc[...]
    m_new = jnp.maximum(m_prev, jnp.max(s, axis=-1, keepdims=True))
    alpha = jnp.exp(m_prev - m_new)
    p = jnp.exp(s - m_new)
    l_sc[...] = alpha * l_sc[...] + jnp.sum(p, axis=-1, keepdims=True)
    acc_sc[...] = alpha * acc_sc[...] + jnp.dot(
        p.astype(v.dtype), v, preferred_element_type=jnp.float32)
    m_sc[...] = m_new

    @pl.when(ki == pl.num_programs(3) - 1)
    def _():
        inv_l = pl.reciprocal(l_sc[...], approx=approx_reciprocal)
        o_ref[0] = (acc_sc[...] * inv_l).astype(o_ref.dtype)


def pallas_flash_attention(q, k, v, *, num_heads, d_k, head_base=(0, 0, 0),
                           tq=256, tk=256, approx_reciprocal=False):
    """softmax(Q K^T) V with heads stored as column groups of width d_k.

    q: [B, Sq, *], k/v: [B, Sk, *].  Head `hh` of q lives in the d_k-wide
    column block (head_base[0] + hh); likewise for k and v.  The output is
    [B, Sq, num_heads * d_k] with heads already merged (ready for the output
    projection) -- no transposes or probs materialization.
    """
    B, Sq, _ = q.shape
    Bk, Sk, _ = k.shape
    assert B == Bk and v.shape[:2] == (B, Sk)
    tq = _pick_tile(Sq, tq, 8)
    tk = _pick_tile(Sk, tk, 8)
    nq, nk = Sq // tq, Sk // tk
    base_q, base_k, base_v = head_base

    itemsize = jnp.dtype(q.dtype).itemsize
    cost = pl.CostEstimate(
        flops=4 * B * num_heads * Sq * Sk * d_k,        # QK^T + PV
        transcendentals=B * num_heads * Sq * Sk,        # exp
        bytes_accessed=(2 * B * Sq * num_heads * d_k
                        + 2 * B * Sk * num_heads * d_k) * itemsize,
    )
    kernel = functools.partial(_flash_kernel,
                               approx_reciprocal=approx_reciprocal)
    return pl.pallas_call(
        kernel,
        out_shape=jax.ShapeDtypeStruct((B, Sq, num_heads * d_k), q.dtype),
        grid_spec=pltpu.PrefetchScalarGridSpec(
            num_scalar_prefetch=0,
            grid=(B, num_heads, nq, nk),
            in_specs=[
                pl.BlockSpec((1, tq, d_k),
                             lambda b, hh, qi, ki: (b, qi, base_q + hh)),
                pl.BlockSpec((1, tk, d_k),
                             lambda b, hh, qi, ki: (b, ki, base_k + hh)),
                pl.BlockSpec((1, tk, d_k),
                             lambda b, hh, qi, ki: (b, ki, base_v + hh)),
            ],
            out_specs=pl.BlockSpec((1, tq, d_k),
                                   lambda b, hh, qi, ki: (b, qi, hh)),
            scratch_shapes=[
                pltpu.VMEM((tq, 1), jnp.float32),    # running max
                pltpu.VMEM((tq, 1), jnp.float32),    # running sum
                pltpu.VMEM((tq, d_k), jnp.float32),  # output accumulator
            ],
        ),
        compiler_params=pltpu.CompilerParams(
            dimension_semantics=("parallel", "parallel", "parallel",
                                 "arbitrary")),
        cost_estimate=cost,
    )(q, k, v)


# ----------------------------------------------------------------------------
# MultiHeadAttention forward
# ----------------------------------------------------------------------------
def _attention_via_transpose(q_p, k_p, v_p, nb, nw, h, d_k, flash):
    # TODO(synk): d_k not lane-aligned (not a multiple of 128): fall back to an
    # explicit head transpose (extra HBM traffic); head packing would avoid it.
    def split(t):
        return (t.reshape(nb, nw, h, d_k).transpose(0, 2, 1, 3)
                 .reshape(nb * h, nw, d_k))
    attn = flash(split(q_p), split(k_p), split(v_p), num_heads=1)
    return (attn.reshape(nb, h, nw, d_k).transpose(0, 2, 1, 3)
                .reshape(nb * nw, h * d_k))


def multi_head_attention(Q, K, V, params, h, *, approx_reciprocal=False):
    """Q, K, V: [nb, nw, d_model]; params: dict of (d_model, d_model) weights
    already laid out so that y = x @ W (PyTorch nn.Linear weight transposed)."""
    nb, nw, d_model = Q.shape
    assert d_model % h == 0
    d_k = d_model // h

    # Fold the 1/sqrt(d_k) attention scaling into the query projection weight:
    # one d_model^2 scale instead of an O(S^2) per-tile divide in the kernel.
    wq_scaled = params["wq"] * jnp.asarray(1.0 / math.sqrt(d_k),
                                           params["wq"].dtype)

    flash = functools.partial(pallas_flash_attention, d_k=d_k,
                              approx_reciprocal=approx_reciprocal)

    if (Q is K) and (K is V):
        # Self-attention: fused QKV projection (single launch, input read once).
        w_qkv = jnp.concatenate([wq_scaled, params["wk"], params["wv"]],
                                axis=1)                      # (d_model, 3*d_model)
        qkv = pallas_matmul(Q.reshape(nb * nw, d_model), w_qkv)
        qkv = qkv.reshape(nb, nw, 3 * d_model)
        if d_k % 128 == 0:
            # Head split is pure DMA addressing: q head hh is column block hh,
            # k is column block h + hh, v is 2h + hh of the fused qkv tensor.
            attn = flash(qkv, qkv, qkv, num_heads=h, head_base=(0, h, 2 * h))
            attn2d = attn.reshape(nb * nw, d_model)
        else:
            q_p = qkv[..., :d_model]
            k_p = qkv[..., d_model:2 * d_model]
            v_p = qkv[..., 2 * d_model:]
            attn2d = _attention_via_transpose(q_p, k_p, v_p, nb, nw, h, d_k, flash)
    else:
        q_p = pallas_matmul(Q.reshape(nb * nw, d_model), wq_scaled)
        k_p = pallas_matmul(K.reshape(nb * nw, d_model), params["wk"])
        v_p = pallas_matmul(V.reshape(nb * nw, d_model), params["wv"])
        q_p = q_p.reshape(nb, nw, d_model)
        k_p = k_p.reshape(nb, nw, d_model)
        v_p = v_p.reshape(nb, nw, d_model)
        if d_k % 128 == 0:
            attn = flash(q_p, k_p, v_p, num_heads=h)
            attn2d = attn.reshape(nb * nw, d_model)
        else:
            attn2d = _attention_via_transpose(q_p, k_p, v_p, nb, nw, h, d_k, flash)

    # Output projection (no bias); attn_dropout + final dropout = identity (eval).
    out = pallas_matmul(attn2d, params["wo"]).reshape(nb, nw, d_model)
    return out


# ----------------------------------------------------------------------------
# Pure-JAX reference for verification (mirrors the PyTorch module exactly)
# ----------------------------------------------------------------------------
def reference_mha(Q, K, V, params, h):
    nb, nw, d_model = Q.shape
    d_k = d_model // h
    scaling = math.sqrt(d_k)

    def proj(x, w):
        y = x.reshape(nb * nw, d_model) @ w
        return y.reshape(nb, nw, h, d_k).transpose(0, 2, 1, 3)

    q = proj(Q, params["wq"])
    k = proj(K, params["wk"])
    v = proj(V, params["wv"])
    scores = jnp.einsum("bhqd,bhkd->bhqk", q, k) / scaling
    probs = jax.nn.softmax(scores, axis=-1)
    attn = jnp.einsum("bhqk,bhkd->bhqd", probs, v)
    x = attn.transpose(0, 2, 1, 3).reshape(nb * nw, d_model)
    return (x @ params["wo"]).reshape(nb, nw, d_model)


if __name__ == "__main__":
    # Small but TPU-aligned shapes: nb=2, nw=128, h=4, d_model=512 (d_k=128).
    nb, nw, h, d_model = 2, 128, 4, 512

    key = jax.random.PRNGKey(0)
    kq, kk, kv, kx, kwq, kwk, kwv, kwo = jax.random.split(key, 8)

    Q = jax.random.normal(kq, (nb, nw, d_model), dtype=jnp.float32)
    K = jax.random.normal(kk, (nb, nw, d_model), dtype=jnp.float32)
    V = jax.random.normal(kv, (nb, nw, d_model), dtype=jnp.float32)
    X = jax.random.normal(kx, (nb, nw, d_model), dtype=jnp.float32)

    scale = 1.0 / math.sqrt(d_model)
    params = {
        "wq": jax.random.uniform(kwq, (d_model, d_model), jnp.float32, -scale, scale),
        "wk": jax.random.uniform(kwk, (d_model, d_model), jnp.float32, -scale, scale),
        "wv": jax.random.uniform(kwv, (d_model, d_model), jnp.float32, -scale, scale),
        "wo": jax.random.uniform(kwo, (d_model, d_model), jnp.float32, -scale, scale),
    }

    # 1) Cross-attention (distinct Q, K, V), f32, fused head-split path.
    out = jax.block_until_ready(multi_head_attention(Q, K, V, params, h))
    ref = reference_mha(Q, K, V, params, h)
    assert out.shape == (nb, nw, d_model)
    assert jnp.allclose(out, ref, atol=1e-4, rtol=1e-4), \
        float(jnp.max(jnp.abs(out - ref)))

    # 2) Self-attention (exercises the fused QKV projection), f32.
    out_sa = jax.block_until_ready(multi_head_attention(X, X, X, params, h))
    ref_sa = reference_mha(X, X, X, params, h)
    assert jnp.allclose(out_sa, ref_sa, atol=1e-4, rtol=1e-4), \
        float(jnp.max(jnp.abs(out_sa - ref_sa)))

    # 3) Non-lane-aligned d_k (h=8 -> d_k=64) fallback path, f32.
    h2 = 8
    out_f = jax.block_until_ready(multi_head_attention(Q, K, V, params, h2))
    ref_f = reference_mha(Q, K, V, params, h2)
    assert jnp.allclose(out_f, ref_f, atol=1e-4, rtol=1e-4), \
        float(jnp.max(jnp.abs(out_f - ref_f)))

    # 4) bf16 MXU operands (f32 accumulation) + approx EUP reciprocal: smoke test.
    Xb = X.astype(jnp.bfloat16)
    params_bf16 = {name: w.astype(jnp.bfloat16) for name, w in params.items()}
    out_bf16 = jax.block_until_ready(
        multi_head_attention(Xb, Xb, Xb, params_bf16, h, approx_reciprocal=True))
    assert out_bf16.shape == (nb, nw, d_model)
    assert bool(jnp.all(jnp.isfinite(out_bf16.astype(jnp.float32))))

    print("KERNEL_OK")
</pallas_src>

<mosaic_0001>
module attributes {stable_mosaic.version = 11 : i64} {
  func.func @_matmul_kernel(%arg0: i32, %arg1: i32, %arg2: i32, %arg3: memref<256x512xf32, #tpu.memory_space<vmem>>, %arg4: memref<512x512xf32, #tpu.memory_space<vmem>>, %arg5: memref<256x512xf32, #tpu.memory_space<vmem>>, %arg6: memref<256x512xf32, #tpu.memory_space<vmem>>) attributes {dimension_semantics = [#tpu.dimension_semantics<parallel>, #tpu.dimension_semantics<parallel>, #tpu.dimension_semantics<arbitrary>], iteration_bounds = array<i64: 1, 1, 1>, scalar_prefetch = 0 : i64, scratch_operands = 1 : i64, tpu.core_type = #tpu.core_type<tc>, window_params = [{transform_indices = @transform_0, window_bounds = array<i64: 256, 512>}, {transform_indices = @transform_1, window_bounds = array<i64: 512, 512>}, {transform_indices = @transform_2, window_bounds = array<i64: 256, 512>}]} {
    %c0_i32 = arith.constant 0 : i32
    %0 = arith.cmpi eq, %arg2, %c0_i32 : i32
    %1 = arith.extui %0 : i1 to i32
    %c0_i32_0 = arith.constant 0 : i32
    %2 = arith.cmpi ne, %1, %c0_i32_0 : i32
    scf.if %2 {
      %cst_10 = arith.constant 0.000000e+00 : f32
      %12 = vector.broadcast %cst_10 : f32 to vector<256x512xf32>
      %c0_11 = arith.constant 0 : index
      %c0_12 = arith.constant 0 : index
      %13 = vector.load %arg6[%c0_11, %c0_12] : memref<256x512xf32, #tpu.memory_space<vmem>>, vector<256x512xf32>
      tpu.vector_store %arg6[%c0_11, %c0_12], %12 {strides = array<i32>} : memref<256x512xf32, #tpu.memory_space<vmem>>, vector<256x512xf32>,
    } else {
    }
    %c0 = arith.constant 0 : index
    %c0_1 = arith.constant 0 : index
    %3 = vector.load %arg6[%c0, %c0_1] : memref<256x512xf32, #tpu.memory_space<vmem>>, vector<256x512xf32>
    %c0_2 = arith.constant 0 : index
    %c0_3 = arith.constant 0 : index
    %4 = vector.load %arg3[%c0_2, %c0_3] : memref<256x512xf32, #tpu.memory_space<vmem>>, vector<256x512xf32>
    %c0_4 = arith.constant 0 : index
    %c0_5 = arith.constant 0 : index
    %5 = vector.load %arg4[%c0_4, %c0_5] : memref<512x512xf32, #tpu.memory_space<vmem>>, vector<512x512xf32>
    %cst = arith.constant dense<0.000000e+00> : vector<256x512xf32>
    %6 = tpu.matmul %4, %5, %cst {dimension_numbers = #tpu.dot_dimension_numbers<[1], [0], [0], [1], [0, 0, 1, 1], [], []>} : vector<256x512xf32>, vector<512x512xf32>, vector<256x512xf32> -> vector<256x512xf32>
    %7 = arith.addf %3, %6 : vector<256x512xf32>
    %c0_6 = arith.constant 0 : index
    %c0_7 = arith.constant 0 : index
    %8 = vector.load %arg6[%c0_6, %c0_7] : memref<256x512xf32, #tpu.memory_space<vmem>>, vector<256x512xf32>
    tpu.vector_store %arg6[%c0_6, %c0_7], %7 {strides = array<i32>} : memref<256x512xf32, #tpu.memory_space<vmem>>, vector<256x512xf32>,
    %c0_i32_8 = arith.constant 0 : i32
    %9 = arith.cmpi eq, %arg2, %c0_i32_8 : i32
    %10 = arith.extui %9 : i1 to i32
    %c0_i32_9 = arith.constant 0 : i32
    %11 = arith.cmpi ne, %10, %c0_i32_9 : i32
    scf.if %11 {
      %c0_10 = arith.constant 0 : index
      %c0_11 = arith.constant 0 : index
      %12 = vector.load %arg6[%c0_10, %c0_11] : memref<256x512xf32, #tpu.memory_space<vmem>>, vector<256x512xf32>
      %c0_12 = arith.constant 0 : index
      %c0_13 = arith.constant 0 : index
      %13 = vector.load %arg5[%c0_12, %c0_13] : memref<256x512xf32, #tpu.memory_space<vmem>>, vector<256x512xf32>
      tpu.vector_store %arg5[%c0_12, %c0_13], %12 {strides = array<i32>} : memref<256x512xf32, #tpu.memory_space<vmem>>, vector<256x512xf32>,
    } else {
    }
    return
  }
  func.func @transform_0(%arg0: i32, %arg1: i32, %arg2: i32) -> (i32, i32) {
    %c0_i32 = arith.constant 0 : i32
    return %arg0, %arg2 : i32, i32
  }
  func.func @transform_1(%arg0: i32, %arg1: i32, %arg2: i32) -> (i32, i32) {
    %c0_i32 = arith.constant 0 : i32
    return %arg2, %arg1 : i32, i32
  }
  func.func @transform_2(%arg0: i32, %arg1: i32, %arg2: i32) -> (i32, i32) {
    %c0_i32 = arith.constant 0 : i32
    return %arg0, %arg1 : i32, i32
  }
}

</mosaic_0001>

<bundles_post_ra>
// kernel: tpu_custom_call.1
= control target key start
LH: loop header
LB: loop body
LE: loop exit
PB: predicated region body
PF: predicated region fallthrough
CT: control target
= control target key end

     0   :  { %7 = vsyncpa [#allocation4], 0  ;;  %s2854_s0 = inlined_call_operand.hbm [shape: f32[256,512], index: 0, kind: input, shape index: {}]   ;;  %s2855_s1 = inlined_call_operand.hbm [shape: f32[512,512], index: 1, kind: input, shape index: {}]   ;;  %s2856_s2 = inlined_call_operand.hbm [shape: f32[256,512], index: 2, kind: output, shape index: {}]  }
   0x1   :  { %8 = vsyncpa [#allocation7], 0 }
   0x2   :  { %9 = vsyncpa [#allocation5], 0  ;;  %s2320_s9 = smov [#allocation3]  }
   0x3   :  { %s15_s10 = sshll.u32 %s2320_s9, 4  ;;  %s16_s10 = int_to_ptr.vmem [resolvable:$true] %s15_s10 }
   0x4   :  { %s2262_s11 = scalar_lea.vmem %s16_s10, 16384  ;;  %p2267_p1 = scmp.lt.s32.totalorder %s16_s10, %s16_s10 }
   0x5   :  { %p2263_p0 = scmp.ne.s32.totalorder %s16_s10, %s2262_s11  ;;  %p2268_p2 = scmp.lt.s32.totalorder %s2262_s11, %s2262_s11 }
   0x7   :  { %p2269_p3 = por %p2268_p2, %p2267_p1 }
   0x9   :  { %p2270_p4 = pnand %p2269_p3, %p2263_p0 }
   0xb   :  { %2273 = shalt.err (!%p2270_p4)
}
   0xc   :  { %s2321_s12 = smov 512   ;;  %s2322_s13 = smov 32  }
   0xd   :  { %21 = dma.hbm_to_vmem [thread:$0]  %s2854_s0, 16384, %s16_s10, [#allocation4], %s2321_s12, %s2321_s12, %s2322_s13  }
   0xe   :  { %s2323_s16 = smov [#allocation6]  }
   0xf   :  { %s27_s17 = sshll.u32 %s2323_s16, 4  ;;  %s28_s17 = int_to_ptr.vmem [resolvable:$true] %s27_s17 }
  0x10   :  { %s2282_s18 = scalar_lea.vmem %s28_s17, 32768  ;;  %p2287_p6 = scmp.lt.s32.totalorder %s28_s17, %s28_s17 }
  0x11   :  { %p2283_p5 = scmp.ne.s32.totalorder %s28_s17, %s2282_s18  ;;  %p2288_p7 = scmp.lt.s32.totalorder %s2282_s18, %s2282_s18 }
  0x13   :  { %p2289_p8 = por %p2288_p7, %p2287_p6 }
  0x15   :  { %p2290_p9 = pnand %p2289_p8, %p2283_p5 }
  0x17   :  { %2293 = shalt.err (!%p2290_p9)
}
  0x18   :  { %33 = dma.hbm_to_vmem [thread:$0]  %s2855_s1, 32768, %s28_s17, [#allocation7], %s2321_s12, %s2321_s12, %s2322_s13  }
  0x19   :  { %2314 = dma.done.wait [#allocation4], 16384  }
  0x1a   :  { %2315 = vsyncadd [#allocation4], 4294950912 }
  0x1b   :  { %2316 = dma.done.wait [#allocation7], 32768  }
  0x1c   :  { %2317 = vsyncadd [#allocation7], 4294934528  ;;  %v489_v0 = vld [vmem:[#allocation6 + $0x1e8] sm:$0xff]  ;;  %v488_v2 = vld [vmem:[#allocation6 + $0x1e0] sm:$0xff]  ;;  %s2324_s0 = smov [#allocation8]  }
  0x1d   :  { %v617_v1 = vld [vmem:[#allocation6 + $0x5e8] sm:$0xff]  ;;  %684 = vmatprep.subr.mxu0 %v489_v0  ;;  %v616_v3 = vld [vmem:[#allocation6 + $0x5e0] sm:$0xff]  ;;  %s2232_s1 = sshll.u32 %s2324_s0, 4  ;;  %s2233_s1 = int_to_ptr.vmem [resolvable:$true] %s2232_s1 }
  0x1e   :  { %941 = vmatprep.subr.mxu1 %v617_v1  ;;  %v485_v4 = vld [vmem:[#allocation6 + $0x1c8] sm:$0xff]  ;;  %685 = vmatpush1.msra.mxu0 %v488_v2  ;;  %v484_v6 = vld [vmem:[#allocation6 + $0x1c0] sm:$0xff]  ;;  %s2294_s21 = scalar_lea.vmem %s2233_s1, 16384  ;;  %p2299_p11 = scmp.lt.s32.totalorder %s2233_s1, %s2233_s1 }
  0x1f   :  { %v613_v5 = vld [vmem:[#allocation6 + $0x5c8] sm:$0xff]  ;;  %942 = vmatpush1.msra.mxu1 %v616_v3  ;;  %v612_v7 = vld [vmem:[#allocation6 + $0x5c0] sm:$0xff]  ;;  %686 = vmatprep.subr.mxu0 %v485_v4  ;;  %p2295_p10 = scmp.ne.s32.totalorder %s2233_s1, %s2294_s21  ;;  %p2300_p12 = scmp.lt.s32.totalorder %s2294_s21, %s2294_s21 }
  0x20   :  { %v481_v8 = vld [vmem:[#allocation6 + $0x1a8] sm:$0xff]  ;;  %943 = vmatprep.subr.mxu1 %v613_v5  ;;  %v480_v10 = vld [vmem:[#allocation6 + $0x1a0] sm:$0xff]  ;;  %687 = vmatpush1.msra.mxu0 %v484_v6 }
  0x21   :  { %v609_v9 = vld [vmem:[#allocation6 + $0x5a8] sm:$0xff]  ;;  %v608_v11 = vld [vmem:[#allocation6 + $0x5a0] sm:$0xff]  ;;  %944 = vmatpush1.msra.mxu1 %v612_v7  ;;  %688 = vmatprep.subr.mxu0 %v481_v8  ;;  %p2301_p13 = por %p2300_p12, %p2299_p11 }
  0x22   :  { %v477_v12 = vld [vmem:[#allocation6 + $0x188] sm:$0xff]  ;;  %945 = vmatprep.subr.mxu1 %v609_v9  ;;  %v476_v14 = vld [vmem:[#allocation6 + $0x180] sm:$0xff]  ;;  %689 = vmatpush1.msra.mxu0 %v480_v10 }
  0x23   :  { %v605_v13 = vld [vmem:[#allocation6 + $0x588] sm:$0xff]  ;;  %v604_v15 = vld [vmem:[#allocation6 + $0x580] sm:$0xff]  ;;  %946 = vmatpush1.msra.mxu1 %v608_v11  ;;  %690 = vmatprep.subr.mxu0 %v477_v12  ;;  %p2302_p0 = pnand %p2301_p13, %p2295_p10 }
  0x24   :  { %v473_v16 = vld [vmem:[#allocation6 + $0x168] sm:$0xff]  ;;  %947 = vmatprep.subr.mxu1 %v605_v13  ;;  %v472_v18 = vld [vmem:[#allocation6 + $0x160] sm:$0xff]  ;;  %691 = vmatpush1.msra.mxu0 %v476_v14 }
  0x25   :  { %v601_v17 = vld [vmem:[#allocation6 + $0x568] sm:$0xff]  ;;  %v600_v19 = vld [vmem:[#allocation6 + $0x560] sm:$0xff]  ;;  %948 = vmatpush1.msra.mxu1 %v604_v15  ;;  %692 = vmatprep.subr.mxu0 %v473_v16 }
  0x26   :  { %v469_v20 = vld [vmem:[#allocation6 + $0x148] sm:$0xff]  ;;  %949 = vmatprep.subr.mxu1 %v601_v17  ;;  %v468_v22 = vld [vmem:[#allocation6 + $0x140] sm:$0xff]  ;;  %693 = vmatpush1.msra.mxu0 %v472_v18 }
  0x27   :  { %v597_v21 = vld [vmem:[#allocation6 + $0x548] sm:$0xff]  ;;  %v596_v23 = vld [vmem:[#allocation6 + $0x540] sm:$0xff]  ;;  %950 = vmatpush1.msra.mxu1 %v600_v19  ;;  %694 = vmatprep.subr.mxu0 %v469_v20 }
  0x28   :  { %v465_v24 = vld [vmem:[#allocation6 + $0x128] sm:$0xff]  ;;  %951 = vmatprep.subr.mxu1 %v597_v21  ;;  %v464_v26 = vld [vmem:[#allocation6 + $0x120] sm:$0xff]  ;;  %695 = vmatpush1.msra.mxu0 %v468_v22 }
  0x29   :  { %v593_v25 = vld [vmem:[#allocation6 + $0x528] sm:$0xff]  ;;  %v592_v27 = vld [vmem:[#allocation6 + $0x520] sm:$0xff]  ;;  %952 = vmatpush1.msra.mxu1 %v596_v23  ;;  %696 = vmatprep.subr.mxu0 %v465_v24 }
  0x2a   :  { %v461_v28 = vld [vmem:[#allocation6 + $0x108] sm:$0xff]  ;;  %953 = vmatprep.subr.mxu1 %v593_v25  ;;  %v460_v30 = vld [vmem:[#allocation6 + $0x100] sm:$0xff]  ;;  %697 = vmatpush1.msra.mxu0 %v464_v26 }
  0x2b   :  { %v589_v29 = vld [vmem:[#allocation6 + $0x508] sm:$0xff]  ;;  %v588_v31 = vld [vmem:[#allocation6 + $0x500] sm:$0xff]  ;;  %954 = vmatpush1.msra.mxu1 %v592_v27  ;;  %698 = vmatprep.subr.mxu0 %v461_v28 }
  0x2c   :  { %v457_v32 = vld [vmem:[#allocation6 + $0xe8] sm:$0xff]  ;;  %955 = vmatprep.subr.mxu1 %v589_v29  ;;  %v456_v34 = vld [vmem:[#allocation6 + $0xe0] sm:$0xff]  ;;  %699 = vmatpush1.msra.mxu0 %v460_v30 }
  0x2d   :  { %v585_v33 = vld [vmem:[#allocation6 + $0x4e8] sm:$0xff]  ;;  %v584_v35 = vld [vmem:[#allocation6 + $0x4e0] sm:$0xff]  ;;  %956 = vmatpush1.msra.mxu1 %v588_v31  ;;  %700 = vmatprep.subr.mxu0 %v457_v32 }
  0x2e   :  { %v453_v36 = vld [vmem:[#allocation6 + $0xc8] sm:$0xff]  ;;  %957 = vmatprep.subr.mxu1 %v585_v33  ;;  %v452_v38 = vld [vmem:[#allocation6 + $0xc0] sm:$0xff]  ;;  %701 = vmatpush1.msra.mxu0 %v456_v34 }
  0x2f   :  { %v581_v37 = vld [vmem:[#allocation6 + $0x4c8] sm:$0xff]  ;;  %v580_v39 = vld [vmem:[#allocation6 + $0x4c0] sm:$0xff]  ;;  %958 = vmatpush1.msra.mxu1 %v584_v35  ;;  %702 = vmatprep.subr.mxu0 %v453_v36 }
  0x30   :  { %v449_v40 = vld [vmem:[#allocation6 + $0xa8] sm:$0xff]  ;;  %959 = vmatprep.subr.mxu1 %v581_v37  ;;  %v448_v42 = vld [vmem:[#allocation6 + $0xa0] sm:$0xff]  ;;  %703 = vmatpush1.msra.mxu0 %v452_v38 }
  0x31   :  { %v577_v41 = vld [vmem:[#allocation6 + $0x4a8] sm:$0xff]  ;;  %v576_v43 = vld [vmem:[#allocation6 + $0x4a0] sm:$0xff]  ;;  %960 = vmatpush1.msra.mxu1 %v580_v39  ;;  %704 = vmatprep.subr.mxu0 %v449_v40 }
  0x32   :  { %v445_v44 = vld [vmem:[#allocation6 + $0x88] sm:$0xff]  ;;  %961 = vmatprep.subr.mxu1 %v577_v41  ;;  %v444_v46 = vld [vmem:[#allocation6 + $0x80] sm:$0xff]  ;;  %705 = vmatpush1.msra.mxu0 %v448_v42 }
  0x33   :  { %v573_v45 = vld [vmem:[#allocation6 + $0x488] sm:$0xff]  ;;  %v572_v47 = vld [vmem:[#allocation6 + $0x480] sm:$0xff]  ;;  %962 = vmatpush1.msra.mxu1 %v576_v43  ;;  %706 = vmatprep.subr.mxu0 %v445_v44 }
  0x34   :  { %v441_v48 = vld [vmem:[#allocation6 + $0x68] sm:$0xff]  ;;  %963 = vmatprep.subr.mxu1 %v573_v45  ;;  %v440_v50 = vld [vmem:[#allocation6 + $0x60] sm:$0xff]  ;;  %707 = vmatpush1.msra.mxu0 %v444_v46 }
  0x35   :  { %v569_v49 = vld [vmem:[#allocation6 + $0x468] sm:$0xff]  ;;  %v568_v51 = vld [vmem:[#allocation6 + $0x460] sm:$0xff]  ;;  %964 = vmatpush1.msra.mxu1 %v572_v47  ;;  %708 = vmatprep.subr.mxu0 %v441_v48 }
  0x36   :  { %v437_v52 = vld [vmem:[#allocation6 + $0x48] sm:$0xff]  ;;  %965 = vmatprep.subr.mxu1 %v569_v49  ;;  %v436_v54 = vld [vmem:[#allocation6 + $0x40] sm:$0xff]  ;;  %709 = vmatpush1.msra.mxu0 %v440_v50 }
  0x37   :  { %v565_v53 = vld [vmem:[#allocation6 + $0x448] sm:$0xff]  ;;  %v564_v55 = vld [vmem:[#allocation6 + $0x440] sm:$0xff]  ;;  %966 = vmatpush1.msra.mxu1 %v568_v51  ;;  %710 = vmatprep.subr.mxu0 %v437_v52 }
  0x38   :  { %v433_v56 = vld [vmem:[#allocation6 + $0x28] sm:$0xff]  ;;  %967 = vmatprep.subr.mxu1 %v565_v53  ;;  %v432_v58 = vld [vmem:[#allocation6 + $0x20] sm:$0xff]  ;;  %711 = vmatpush1.msra.mxu0 %v436_v54 }
  0x39   :  { %v561_v57 = vld [vmem:[#allocation6 + $0x428] sm:$0xff]  ;;  %v560_v59 = vld [vmem:[#allocation6 + $0x420] sm:$0xff]  ;;  %968 = vmatpush1.msra.mxu1 %v564_v55  ;;  %712 = vmatprep.subr.mxu0 %v433_v56 }
  0x3a   :  { %v429_v60 = vld [vmem:[#allocation6 + $0x8] sm:$0xff]  ;;  %969 = vmatprep.subr.mxu1 %v561_v57  ;;  %v428_v62 = vld [vmem:[#allocation6] sm:$0xff]  ;;  %713 = vmatpush1.msra.mxu0 %v432_v58 }
  0x3b   :  { %v557_v61 = vld [vmem:[#allocation6 + $0x408] sm:$0xff]  ;;  %v556_v63 = vld [vmem:[#allocation6 + $0x400] sm:$0xff]  ;;  %970 = vmatpush1.msra.mxu1 %v560_v59  ;;  %714 = vmatprep.subr.mxu0 %v429_v60 }
  0x3c   :  { %v553_v0 = vld [vmem:[#allocation6 + $0x3e8] sm:$0xff]  ;;  %971 = vmatprep.subr.mxu1 %v557_v61  ;;  %v552_v2 = vld [vmem:[#allocation6 + $0x3e0] sm:$0xff]  ;;  %715 = vmatpush1.msra.mxu0 %v428_v62 }
  0x3d   :  { %v681_v1 = vld [vmem:[#allocation6 + $0x7e8] sm:$0xff]  ;;  %v680_v3 = vld [vmem:[#allocation6 + $0x7e0] sm:$0xff]  ;;  %972 = vmatpush1.msra.mxu1 %v556_v63  ;;  %716 = vmatprep.subr.mxu0 %v553_v0 }
  0x3e   :  { %v549_v4 = vld [vmem:[#allocation6 + $0x3c8] sm:$0xff]  ;;  %973 = vmatprep.subr.mxu1 %v681_v1  ;;  %v548_v6 = vld [vmem:[#allocation6 + $0x3c0] sm:$0xff]  ;;  %717 = vmatpush2.msra.mxu0 %v552_v2  ;;  %v303_v1 = vld [vmem:[#allocation3 + $0x18] sm:$0xff] }
  0x3f   :  { %v677_v5 = vld [vmem:[#allocation6 + $0x7c8] sm:$0xff]  ;;  %v676_v7 = vld [vmem:[#allocation6 + $0x7c0] sm:$0xff]  ;;  %974 = vmatpush2.msra.mxu1 %v680_v3  ;;  %718 = vmatprep.subr.mxu0 %v549_v4  ;;  %v302_v3 = vld [vmem:[#allocation3 + $0x10] sm:$0xff] }
  0x40   :  { %v545_v8 = vld [vmem:[#allocation6 + $0x3a8] sm:$0xff]  ;;  %975 = vmatprep.subr.mxu1 %v677_v5  ;;  %v544_v10 = vld [vmem:[#allocation6 + $0x3a0] sm:$0xff]  ;;  %719 = vmatpush2.msra.mxu0 %v548_v6  ;;  %v491_v4 = vld [vmem:[#allocation6 + $0x1f8] sm:$0xff] }
  0x41   :  { %v673_v9 = vld [vmem:[#allocation6 + $0x7a8] sm:$0xff]  ;;  %v672_v11 = vld [vmem:[#allocation6 + $0x7a0] sm:$0xff]  ;;  %976 = vmatpush2.msra.mxu1 %v676_v7  ;;  %720 = vmatprep.subr.mxu0 %v545_v8  ;;  %v619_v5 = vld [vmem:[#allocation6 + $0x5f8] sm:$0xff] }
  0x42   :  { %v541_v12 = vld [vmem:[#allocation6 + $0x388] sm:$0xff]  ;;  %977 = vmatprep.subr.mxu1 %v673_v9  ;;  %v540_v14 = vld [vmem:[#allocation6 + $0x380] sm:$0xff]  ;;  %721 = vmatpush2.msra.mxu0 %v544_v10  ;;  %v490_v6 = vld [vmem:[#allocation6 + $0x1f0] sm:$0xff] }
  0x43   :  { %v669_v13 = vld [vmem:[#allocation6 + $0x788] sm:$0xff]  ;;  %v668_v15 = vld [vmem:[#allocation6 + $0x780] sm:$0xff]  ;;  %978 = vmatpush2.msra.mxu1 %v672_v11  ;;  %722 = vmatprep.subr.mxu0 %v541_v12  ;;  %v618_v7 = vld [vmem:[#allocation6 + $0x5f0] sm:$0xff] }
  0x44   :  { %v537_v16 = vld [vmem:[#allocation6 + $0x368] sm:$0xff]  ;;  %979 = vmatprep.subr.mxu1 %v669_v13  ;;  %v536_v18 = vld [vmem:[#allocation6 + $0x360] sm:$0xff]  ;;  %723 = vmatpush2.msra.mxu0 %v540_v14  ;;  %v2354_v9 = vld [vmem:[#allocation3 + $0x38] sm:$0xff] }
  0x45   :  { %v665_v17 = vld [vmem:[#allocation6 + $0x768] sm:$0xff]  ;;  %v664_v19 = vld [vmem:[#allocation6 + $0x760] sm:$0xff]  ;;  %980 = vmatpush2.msra.mxu1 %v668_v15  ;;  %724 = vmatprep.subr.mxu0 %v537_v16  ;;  %v2358_v11 = vld [vmem:[#allocation3 + $0x30] sm:$0xff] }
  0x46   :  { %v533_v20 = vld [vmem:[#allocation6 + $0x348] sm:$0xff]  ;;  %981 = vmatprep.subr.mxu1 %v665_v17  ;;  %v532_v22 = vld [vmem:[#allocation6 + $0x340] sm:$0xff]  ;;  %725 = vmatpush2.msra.mxu0 %v536_v18  ;;  %v487_v12 = vld [vmem:[#allocation6 + $0x1d8] sm:$0xff] }
  0x47   :  { %v661_v21 = vld [vmem:[#allocation6 + $0x748] sm:$0xff]  ;;  %v660_v23 = vld [vmem:[#allocation6 + $0x740] sm:$0xff]  ;;  %982 = vmatpush2.msra.mxu1 %v664_v19  ;;  %726 = vmatprep.subr.mxu0 %v533_v20  ;;  %v615_v13 = vld [vmem:[#allocation6 + $0x5d8] sm:$0xff] }
  0x48   :  { %v529_v24 = vld [vmem:[#allocation6 + $0x328] sm:$0xff]  ;;  %983 = vmatprep.subr.mxu1 %v661_v21  ;;  %v528_v26 = vld [vmem:[#allocation6 + $0x320] sm:$0xff]  ;;  %727 = vmatpush2.msra.mxu0 %v532_v22  ;;  %v486_v14 = vld [vmem:[#allocation6 + $0x1d0] sm:$0xff] }
  0x49   :  { %v657_v25 = vld [vmem:[#allocation6 + $0x728] sm:$0xff]  ;;  %v656_v27 = vld [vmem:[#allocation6 + $0x720] sm:$0xff]  ;;  %984 = vmatpush2.msra.mxu1 %v660_v23  ;;  %728 = vmatprep.subr.mxu0 %v529_v24  ;;  %v614_v15 = vld [vmem:[#allocation6 + $0x5d0] sm:$0xff] }
  0x4a   :  { %v525_v28 = vld [vmem:[#allocation6 + $0x308] sm:$0xff]  ;;  %985 = vmatprep.subr.mxu1 %v657_v25  ;;  %v524_v30 = vld [vmem:[#allocation6 + $0x300] sm:$0xff]  ;;  %729 = vmatpush2.msra.mxu0 %v528_v26  ;;  %v2366_v17 = vld [vmem:[#allocation3 + $0x58] sm:$0xff] }
  0x4b   :  { %v653_v29 = vld [vmem:[#allocation6 + $0x708] sm:$0xff]  ;;  %v652_v31 = vld [vmem:[#allocation6 + $0x700] sm:$0xff]  ;;  %986 = vmatpush2.msra.mxu1 %v656_v27  ;;  %730 = vmatprep.subr.mxu0 %v525_v28  ;;  %v2370_v19 = vld [vmem:[#allocation3 + $0x50] sm:$0xff] }
  0x4c   :  { %v521_v32 = vld [vmem:[#allocation6 + $0x2e8] sm:$0xff]  ;;  %987 = vmatprep.subr.mxu1 %v653_v29  ;;  %v520_v34 = vld [vmem:[#allocation6 + $0x2e0] sm:$0xff]  ;;  %731 = vmatpush2.msra.mxu0 %v524_v30  ;;  %v483_v20 = vld [vmem:[#allocation6 + $0x1b8] sm:$0xff] }
  0x4d   :  { %v649_v33 = vld [vmem:[#allocation6 + $0x6e8] sm:$0xff]  ;;  %v648_v35 = vld [vmem:[#allocation6 + $0x6e0] sm:$0xff]  ;;  %988 = vmatpush2.msra.mxu1 %v652_v31  ;;  %732 = vmatprep.subr.mxu0 %v521_v32  ;;  %v611_v21 = vld [vmem:[#allocation6 + $0x5b8] sm:$0xff] }
  0x4e   :  { %v517_v36 = vld [vmem:[#allocation6 + $0x2c8] sm:$0xff]  ;;  %989 = vmatprep.subr.mxu1 %v649_v33  ;;  %v516_v38 = vld [vmem:[#allocation6 + $0x2c0] sm:$0xff]  ;;  %733 = vmatpush2.msra.mxu0 %v520_v34  ;;  %v482_v22 = vld [vmem:[#allocation6 + $0x1b0] sm:$0xff] }
  0x4f   :  { %v645_v37 = vld [vmem:[#allocation6 + $0x6c8] sm:$0xff]  ;;  %v644_v39 = vld [vmem:[#allocation6 + $0x6c0] sm:$0xff]  ;;  %990 = vmatpush2.msra.mxu1 %v648_v35  ;;  %734 = vmatprep.subr.mxu0 %v517_v36  ;;  %v610_v23 = vld [vmem:[#allocation6 + $0x5b0] sm:$0xff] }
  0x50   :  { %v513_v40 = vld [vmem:[#allocation6 + $0x2a8] sm:$0xff]  ;;  %991 = vmatprep.subr.mxu1 %v645_v37  ;;  %v512_v42 = vld [vmem:[#allocation6 + $0x2a0] sm:$0xff]  ;;  %735 = vmatpush2.msra.mxu0 %v516_v38  ;;  %v2378_v25 = vld [vmem:[#allocation3 + $0x78] sm:$0xff] }
  0x51   :  { %v641_v41 = vld [vmem:[#allocation6 + $0x6a8] sm:$0xff]  ;;  %v640_v43 = vld [vmem:[#allocation6 + $0x6a0] sm:$0xff]  ;;  %992 = vmatpush2.msra.mxu1 %v644_v39  ;;  %736 = vmatprep.subr.mxu0 %v513_v40  ;;  %v2382_v27 = vld [vmem:[#allocation3 + $0x70] sm:$0xff] }
  0x52   :  { %v509_v44 = vld [vmem:[#allocation6 + $0x288] sm:$0xff]  ;;  %993 = vmatprep.subr.mxu1 %v641_v41  ;;  %v508_v46 = vld [vmem:[#allocation6 + $0x280] sm:$0xff]  ;;  %737 = vmatpush2.msra.mxu0 %v512_v42  ;;  %v479_v28 = vld [vmem:[#allocation6 + $0x198] sm:$0xff] }
  0x53   :  { %v637_v45 = vld [vmem:[#allocation6 + $0x688] sm:$0xff]  ;;  %v636_v47 = vld [vmem:[#allocation6 + $0x680] sm:$0xff]  ;;  %994 = vmatpush2.msra.mxu1 %v640_v43  ;;  %738 = vmatprep.subr.mxu0 %v509_v44  ;;  %v607_v29 = vld [vmem:[#allocation6 + $0x598] sm:$0xff] }
  0x54   :  { %v505_v48 = vld [vmem:[#allocation6 + $0x268] sm:$0xff]  ;;  %995 = vmatprep.subr.mxu1 %v637_v45  ;;  %v504_v50 = vld [vmem:[#allocation6 + $0x260] sm:$0xff]  ;;  %739 = vmatpush2.msra.mxu0 %v508_v46  ;;  %v478_v30 = vld [vmem:[#allocation6 + $0x190] sm:$0xff] }
  0x55   :  { %v633_v49 = vld [vmem:[#allocation6 + $0x668] sm:$0xff]  ;;  %v632_v51 = vld [vmem:[#allocation6 + $0x660] sm:$0xff]  ;;  %996 = vmatpush2.msra.mxu1 %v636_v47  ;;  %740 = vmatprep.subr.mxu0 %v505_v48  ;;  %v606_v31 = vld [vmem:[#allocation6 + $0x590] sm:$0xff] }
  0x56   :  { %v501_v52 = vld [vmem:[#allocation6 + $0x248] sm:$0xff]  ;;  %997 = vmatprep.subr.mxu1 %v633_v49  ;;  %v500_v54 = vld [vmem:[#allocation6 + $0x240] sm:$0xff]  ;;  %741 = vmatpush2.msra.mxu0 %v504_v50  ;;  %v2390_v33 = vld [vmem:[#allocation3 + $0x98] sm:$0xff] }
  0x57   :  { %v629_v53 = vld [vmem:[#allocation6 + $0x648] sm:$0xff]  ;;  %v628_v55 = vld [vmem:[#allocation6 + $0x640] sm:$0xff]  ;;  %998 = vmatpush2.msra.mxu1 %v632_v51  ;;  %742 = vmatprep.subr.mxu0 %v501_v52  ;;  %v2394_v35 = vld [vmem:[#allocation3 + $0x90] sm:$0xff] }
  0x58   :  { %v497_v56 = vld [vmem:[#allocation6 + $0x228] sm:$0xff]  ;;  %999 = vmatprep.subr.mxu1 %v629_v53  ;;  %v496_v58 = vld [vmem:[#allocation6 + $0x220] sm:$0xff]  ;;  %743 = vmatpush2.msra.mxu0 %v500_v54  ;;  %v475_v36 = vld [vmem:[#allocation6 + $0x178] sm:$0xff] }
  0x59   :  { %v625_v57 = vld [vmem:[#allocation6 + $0x628] sm:$0xff]  ;;  %v624_v59 = vld [vmem:[#allocation6 + $0x620] sm:$0xff]  ;;  %1000 = vmatpush2.msra.mxu1 %v628_v55  ;;  %744 = vmatprep.subr.mxu0 %v497_v56  ;;  %v603_v37 = vld [vmem:[#allocation6 + $0x578] sm:$0xff] }
  0x5a   :  { %v493_v60 = vld [vmem:[#allocation6 + $0x208] sm:$0xff]  ;;  %1001 = vmatprep.subr.mxu1 %v625_v57  ;;  %v492_v62 = vld [vmem:[#allocation6 + $0x200] sm:$0xff]  ;;  %745 = vmatpush2.msra.mxu0 %v496_v58  ;;  %v474_v38 = vld [vmem:[#allocation6 + $0x170] sm:$0xff] }
  0x5b   :  { %v621_v61 = vld [vmem:[#allocation6 + $0x608] sm:$0xff]  ;;  %1002 = vmatpush2.msra.mxu1 %v624_v59  ;;  %v620_v0 = vld [vmem:[#allocation6 + $0x600] sm:$0xff]  ;;  %746 = vmatprep.subr.mxu0 %v493_v60  ;;  %v602_v39 = vld [vmem:[#allocation6 + $0x570] sm:$0xff] }
  0x5c   :  { %v301_v63 = vld [vmem:[#allocation3 + $0x8] sm:$0xff]  ;;  %1003 = vmatprep.subr.mxu1 %v621_v61  ;;  %v300_v2 = vld [vmem:[#allocation3] sm:$0xff]  ;;  %747 = vmatpush2.msra.mxu0 %v492_v62  ;;  %v2402_v41 = vld [vmem:[#allocation3 + $0xb8] sm:$0xff] }
  0x5d   :  { %748 = vmatprep.mubr.f32.mxu0 %v301_v63  ;;  %1004 = vmatpush2.msra.mxu1 %v620_v0  ;;  %v2352_v8 = vld [vmem:[#allocation3 + $0x28] sm:$0xff]  ;;  %v2356_v10 = vld [vmem:[#allocation3 + $0x20] sm:$0xff]  ;;  %v2406_v43 = vld [vmem:[#allocation3 + $0xb0] sm:$0xff] }
  0x5e   :  { %1005 = vmatprep.mubr.f32.mxu1 %v303_v1  ;;  %749 = vmatmul.mubr.f32.vlgmr.msra.gmra.mxu0 %v300_v2  ;;  %v2364_v16 = vld [vmem:[#allocation3 + $0x48] sm:$0xff]  ;;  %v2368_v18 = vld [vmem:[#allocation3 + $0x40] sm:$0xff]  ;;  %v471_v44 = vld [vmem:[#allocation6 + $0x158] sm:$0xff] }
  0x5f   :  { %1006 = vmatmul.mubr.f32.vlgmr.msra.gmra.mxu1 %v302_v3  ;;  %1198 = vmatprep.subr.mxu0 %v491_v4  ;;  %v2376_v24 = vld [vmem:[#allocation3 + $0x68] sm:$0xff]  ;;  %v2380_v26 = vld [vmem:[#allocation3 + $0x60] sm:$0xff]  ;;  %v599_v45 = vld [vmem:[#allocation6 + $0x558] sm:$0xff] }
  0x60   :  { %1455 = vmatprep.subr.mxu1 %v619_v5  ;;  %1199 = vmatpush1.msra.mxu0 %v490_v6  ;;  %v2388_v32 = vld [vmem:[#allocation3 + $0x88] sm:$0xff]  ;;  %v2392_v34 = vld [vmem:[#allocation3 + $0x80] sm:$0xff]  ;;  %v470_v46 = vld [vmem:[#allocation6 + $0x150] sm:$0xff] }
  0x61   :  { %1456 = vmatpush1.msra.mxu1 %v618_v7  ;;  %754 = vmatprep.mubr.f32.mxu0 %v2352_v8  ;;  %v2400_v40 = vld [vmem:[#allocation3 + $0xa8] sm:$0xff]  ;;  %v2404_v42 = vld [vmem:[#allocation3 + $0xa0] sm:$0xff]  ;;  %v598_v47 = vld [vmem:[#allocation6 + $0x550] sm:$0xff] }
  0x62   :  { %1011 = vmatprep.mubr.f32.mxu1 %v2354_v9  ;;  %755 = vmatmul.mubr.f32.gmra.mxu0 %v2356_v10  ;;  %v2412_v48 = vld [vmem:[#allocation3 + $0xc8] sm:$0xff]  ;;  %v2414_v49 = vld [vmem:[#allocation3 + $0xd8] sm:$0xff]  ;;  %v2416_v50 = vld [vmem:[#allocation3 + $0xc0] sm:$0xff] }
  0x63   :  { %1012 = vmatmul.mubr.f32.gmra.mxu1 %v2358_v11  ;;  %1200 = vmatprep.subr.mxu0 %v487_v12  ;;  %v2418_v51 = vld [vmem:[#allocation3 + $0xd0] sm:$0xff]  ;;  %v467_v52 = vld [vmem:[#allocation6 + $0x138] sm:$0xff]  ;;  %v2424_v56 = vld [vmem:[#allocation3 + $0xe8] sm:$0xff] }
  0x64   :  { %1457 = vmatprep.subr.mxu1 %v615_v13  ;;  %1201 = vmatpush1.msra.mxu0 %v486_v14  ;;  %v595_v53 = vld [vmem:[#allocation6 + $0x538] sm:$0xff]  ;;  %v466_v54 = vld [vmem:[#allocation6 + $0x130] sm:$0xff]  ;;  %v2428_v58 = vld [vmem:[#allocation3 + $0xe0] sm:$0xff] }
  0x65   :  { %1458 = vmatpush1.msra.mxu1 %v614_v15  ;;  %760 = vmatprep.mubr.f32.mxu0 %v2364_v16  ;;  %v594_v55 = vld [vmem:[#allocation6 + $0x530] sm:$0xff]  ;;  %v2426_v57 = vld [vmem:[#allocation3 + $0xf8] sm:$0xff]  ;;  %v2436_v0 = vld [vmem:[#allocation3 + $0x108] sm:$0xff] }
  0x66   :  { %1017 = vmatprep.mubr.f32.mxu1 %v2366_v17  ;;  %761 = vmatmul.mubr.f32.gmra.mxu0 %v2368_v18  ;;  %v2430_v59 = vld [vmem:[#allocation3 + $0xf0] sm:$0xff]  ;;  %v463_v60 = vld [vmem:[#allocation6 + $0x118] sm:$0xff]  ;;  %v2440_v2 = vld [vmem:[#allocation3 + $0x100] sm:$0xff] }
  0x67   :  { %1018 = vmatmul.mubr.f32.gmra.mxu1 %v2370_v19  ;;  %1202 = vmatprep.subr.mxu0 %v483_v20  ;;  %v591_v61 = vld [vmem:[#allocation6 + $0x518] sm:$0xff]  ;;  %v462_v62 = vld [vmem:[#allocation6 + $0x110] sm:$0xff]  ;;  %v2448_v12 = vld [vmem:[#allocation3 + $0x128] sm:$0xff] }
  0x68   :  { %1459 = vmatprep.subr.mxu1 %v611_v21  ;;  %1203 = vmatpush1.msra.mxu0 %v482_v22  ;;  %v590_v63 = vld [vmem:[#allocation6 + $0x510] sm:$0xff]  ;;  %v2438_v1 = vld [vmem:[#allocation3 + $0x118] sm:$0xff]  ;;  %v2452_v14 = vld [vmem:[#allocation3 + $0x120] sm:$0xff] }
  0x69   :  { %1460 = vmatpush1.msra.mxu1 %v610_v23  ;;  %766 = vmatprep.mubr.f32.mxu0 %v2376_v24  ;;  %v2442_v3 = vld [vmem:[#allocation3 + $0x110] sm:$0xff]  ;;  %v459_v4 = vld [vmem:[#allocation6 + $0xf8] sm:$0xff] }
  0x6a   :  { %1023 = vmatprep.mubr.f32.mxu1 %v2378_v25  ;;  %767 = vmatmul.mubr.f32.gmra.mxu0 %v2380_v26  ;;  %v587_v5 = vld [vmem:[#allocation6 + $0x4f8] sm:$0xff]  ;;  %v458_v6 = vld [vmem:[#allocation6 + $0xf0] sm:$0xff] }
  0x6b   :  { %1024 = vmatmul.mubr.f32.gmra.mxu1 %v2382_v27  ;;  %1204 = vmatprep.subr.mxu0 %v479_v28  ;;  %v586_v7 = vld [vmem:[#allocation6 + $0x4f0] sm:$0xff]  ;;  %v2450_v13 = vld [vmem:[#allocation3 + $0x138] sm:$0xff]  ;;  %v2460_v28 = vld [vmem:[#allocation3 + $0x148] sm:$0xff] }
  0x6c   :  { %1461 = vmatprep.subr.mxu1 %v607_v29  ;;  %1205 = vmatpush1.msra.mxu0 %v478_v30  ;;  %v2454_v15 = vld [vmem:[#allocation3 + $0x130] sm:$0xff]  ;;  %v455_v20 = vld [vmem:[#allocation6 + $0xd8] sm:$0xff]  ;;  %v2464_v30 = vld [vmem:[#allocation3 + $0x140] sm:$0xff] }
  0x6d   :  { %1462 = vmatpush1.msra.mxu1 %v606_v31  ;;  %772 = vmatprep.mubr.f32.mxu0 %v2388_v32  ;;  %v583_v21 = vld [vmem:[#allocation6 + $0x4d8] sm:$0xff]  ;;  %v454_v22 = vld [vmem:[#allocation6 + $0xd0] sm:$0xff] }
  0x6e   :  { %1029 = vmatprep.mubr.f32.mxu1 %v2390_v33  ;;  %773 = vmatmul.mubr.f32.gmra.mxu0 %v2392_v34  ;;  %v582_v23 = vld [vmem:[#allocation6 + $0x4d0] sm:$0xff]  ;;  %v2462_v29 = vld [vmem:[#allocation3 + $0x158] sm:$0xff] }
  0x6f   :  { %1030 = vmatmul.mubr.f32.gmra.mxu1 %v2394_v35  ;;  %1206 = vmatprep.subr.mxu0 %v475_v36  ;;  %v2466_v31 = vld [vmem:[#allocation3 + $0x150] sm:$0xff]  ;;  %v451_v36 = vld [vmem:[#allocation6 + $0xb8] sm:$0xff] }
  0x70   :  { %1463 = vmatprep.subr.mxu1 %v603_v37  ;;  %1207 = vmatpush1.msra.mxu0 %v474_v38  ;;  %v579_v37 = vld [vmem:[#allocation6 + $0x4b8] sm:$0xff]  ;;  %v450_v38 = vld [vmem:[#allocation6 + $0xb0] sm:$0xff] }
  0x71   :  { %1464 = vmatpush1.msra.mxu1 %v602_v39  ;;  %778 = vmatprep.mubr.f32.mxu0 %v2400_v40  ;;  %v578_v39 = vld [vmem:[#allocation6 + $0x4b0] sm:$0xff] }
  0x72   :  { %1035 = vmatprep.mubr.f32.mxu1 %v2402_v41  ;;  %779 = vmatmul.mubr.f32.gmra.mxu0 %v2404_v42 }
  0x73   :  { %1036 = vmatmul.mubr.f32.gmra.mxu1 %v2406_v43  ;;  %1208 = vmatprep.subr.mxu0 %v471_v44  ;;  %v2472_v44 = vld [vmem:[#allocation3 + $0x168] sm:$0xff] }
  0x74   :  { %1465 = vmatprep.subr.mxu1 %v599_v45  ;;  %1209 = vmatpush1.msra.mxu0 %v470_v46  ;;  %v2474_v45 = vld [vmem:[#allocation3 + $0x178] sm:$0xff]  ;;  %v2476_v46 = vld [vmem:[#allocation3 + $0x160] sm:$0xff] }
  0x75   :  { %1466 = vmatpush1.msra.mxu1 %v598_v47  ;;  %784 = vmatprep.mubr.f32.mxu0 %v2412_v48  ;;  %v2478_v47 = vld [vmem:[#allocation3 + $0x170] sm:$0xff] }
  0x76   :  { %1041 = vmatprep.mubr.f32.mxu1 %v2414_v49  ;;  %785 = vmatmul.mubr.f32.gmra.mxu0 %v2416_v50 }
  0x77   :  { %1042 = vmatmul.mubr.f32.gmra.mxu1 %v2418_v51  ;;  %1210 = vmatprep.subr.mxu0 %v467_v52  ;;  %v447_v52 = vld [vmem:[#allocation6 + $0x98] sm:$0xff] }
  0x78   :  { %1467 = vmatprep.subr.mxu1 %v595_v53  ;;  %1211 = vmatpush1.msra.mxu0 %v466_v54  ;;  %v575_v53 = vld [vmem:[#allocation6 + $0x498] sm:$0xff]  ;;  %v446_v54 = vld [vmem:[#allocation6 + $0x90] sm:$0xff] }
  0x79   :  { %1468 = vmatpush1.msra.mxu1 %v594_v55  ;;  %790 = vmatprep.mubr.f32.mxu0 %v2424_v56  ;;  %v574_v55 = vld [vmem:[#allocation6 + $0x490] sm:$0xff] }
  0x7a   :  { %1047 = vmatprep.mubr.f32.mxu1 %v2426_v57  ;;  %791 = vmatmul.mubr.f32.gmra.mxu0 %v2428_v58 }
  0x7b   :  { %1048 = vmatmul.mubr.f32.gmra.mxu1 %v2430_v59  ;;  %1212 = vmatprep.subr.mxu0 %v463_v60  ;;  %v2484_v60 = vld [vmem:[#allocation3 + $0x188] sm:$0xff] }
  0x7c   :  { %1469 = vmatprep.subr.mxu1 %v591_v61  ;;  %1213 = vmatpush1.msra.mxu0 %v462_v62  ;;  %v2486_v61 = vld [vmem:[#allocation3 + $0x198] sm:$0xff]  ;;  %v2488_v62 = vld [vmem:[#allocation3 + $0x180] sm:$0xff] }
  0x7d   :  { %1470 = vmatpush1.msra.mxu1 %v590_v63  ;;  %796 = vmatprep.mubr.f32.mxu0 %v2436_v0  ;;  %v2490_v63 = vld [vmem:[#allocation3 + $0x190] sm:$0xff] }
  0x7e   :  { %1053 = vmatprep.mubr.f32.mxu1 %v2438_v1  ;;  %797 = vmatmul.mubr.f32.gmra.mxu0 %v2440_v2 }
  0x7f   :  { %1054 = vmatmul.mubr.f32.gmra.mxu1 %v2442_v3  ;;  %1214 = vmatprep.subr.mxu0 %v459_v4  ;;  %v443_v4 = vld [vmem:[#allocation6 + $0x78] sm:$0xff] }
  0x80   :  { %1471 = vmatprep.subr.mxu1 %v587_v5  ;;  %1215 = vmatpush1.msra.mxu0 %v458_v6  ;;  %v571_v5 = vld [vmem:[#allocation6 + $0x478] sm:$0xff]  ;;  %v442_v6 = vld [vmem:[#allocation6 + $0x70] sm:$0xff] }
  0x81   :  { %1472 = vmatpush1.msra.mxu1 %v586_v7  ;;  %802 = vmatprep.mubr.f32.mxu0 %v2448_v12  ;;  %v570_v7 = vld [vmem:[#allocation6 + $0x470] sm:$0xff] }
  0x82   :  { %1059 = vmatprep.mubr.f32.mxu1 %v2450_v13  ;;  %803 = vmatmul.mubr.f32.gmra.mxu0 %v2452_v14 }
  0x83   :  { %1060 = vmatmul.mubr.f32.gmra.mxu1 %v2454_v15  ;;  %1216 = vmatprep.subr.mxu0 %v455_v20  ;;  %v2496_v20 = vld [vmem:[#allocation3 + $0x1a8] sm:$0xff] }
  0x84   :  { %1473 = vmatprep.subr.mxu1 %v583_v21  ;;  %1217 = vmatpush1.msra.mxu0 %v454_v22  ;;  %v2498_v21 = vld [vmem:[#allocation3 + $0x1b8] sm:$0xff]  ;;  %v2500_v22 = vld [vmem:[#allocation3 + $0x1a0] sm:$0xff] }
  0x85   :  { %1474 = vmatpush1.msra.mxu1 %v582_v23  ;;  %808 = vmatprep.mubr.f32.mxu0 %v2460_v28  ;;  %v2502_v23 = vld [vmem:[#allocation3 + $0x1b0] sm:$0xff] }
  0x86   :  { %1065 = vmatprep.mubr.f32.mxu1 %v2462_v29  ;;  %809 = vmatmul.mubr.f32.gmra.mxu0 %v2464_v30 }
  0x87   :  { %1066 = vmatmul.mubr.f32.gmra.mxu1 %v2466_v31  ;;  %1218 = vmatprep.subr.mxu0 %v451_v36  ;;  %v439_v36 = vld [vmem:[#allocation6 + $0x58] sm:$0xff] }
  0x88   :  { %1475 = vmatprep.subr.mxu1 %v579_v37  ;;  %1219 = vmatpush1.msra.mxu0 %v450_v38  ;;  %v567_v37 = vld [vmem:[#allocation6 + $0x458] sm:$0xff]  ;;  %v438_v38 = vld [vmem:[#allocation6 + $0x50] sm:$0xff] }
  0x89   :  { %1476 = vmatpush1.msra.mxu1 %v578_v39  ;;  %814 = vmatprep.mubr.f32.mxu0 %v2472_v44  ;;  %v566_v39 = vld [vmem:[#allocation6 + $0x450] sm:$0xff] }
  0x8a   :  { %1071 = vmatprep.mubr.f32.mxu1 %v2474_v45  ;;  %815 = vmatmul.mubr.f32.gmra.mxu0 %v2476_v46 }
  0x8b   :  { %1072 = vmatmul.mubr.f32.gmra.mxu1 %v2478_v47  ;;  %1220 = vmatprep.subr.mxu0 %v447_v52  ;;  %v2508_v52 = vld [vmem:[#allocation3 + $0x1c8] sm:$0xff] }
  0x8c   :  { %1477 = vmatprep.subr.mxu1 %v575_v53  ;;  %1221 = vmatpush1.msra.mxu0 %v446_v54  ;;  %2925 = vst [vmem:[#allocation12_spill] sm:$0xff] %v2508_v52  ;;  %v2510_v53 = vld [vmem:[#allocation3 + $0x1d8] sm:$0xff]  ;;  %v2512_v54 = vld [vmem:[#allocation3 + $0x1c0] sm:$0xff] }
  0x8d   :  { %1478 = vmatpush1.msra.mxu1 %v574_v55  ;;  %820 = vmatprep.mubr.f32.mxu0 %v2484_v60  ;;  %2926 = vst [vmem:[#allocation13_spill] sm:$0xff] %v2510_v53  ;;  %2927 = vst [vmem:[#allocation14_spill] sm:$0xff] %v2512_v54  ;;  %v2514_v55 = vld [vmem:[#allocation3 + $0x1d0] sm:$0xff] }
  0x8e   :  { %1077 = vmatprep.mubr.f32.mxu1 %v2486_v61  ;;  %821 = vmatmul.mubr.f32.gmra.mxu0 %v2488_v62  ;;  %2928 = vst [vmem:[#allocation15_spill] sm:$0xff] %v2514_v55 }
  0x8f   :  { %1078 = vmatmul.mubr.f32.gmra.mxu1 %v2490_v63  ;;  %1222 = vmatprep.subr.mxu0 %v443_v4  ;;  %v435_v4 = vld [vmem:[#allocation6 + $0x38] sm:$0xff] }
  0x90   :  { %1479 = vmatprep.subr.mxu1 %v571_v5  ;;  %1223 = vmatpush1.msra.mxu0 %v442_v6  ;;  %v563_v5 = vld [vmem:[#allocation6 + $0x438] sm:$0xff]  ;;  %v434_v6 = vld [vmem:[#allocation6 + $0x30] sm:$0xff] }
  0x91   :  { %1480 = vmatpush1.msra.mxu1 %v570_v7  ;;  %826 = vmatprep.mubr.f32.mxu0 %v2496_v20  ;;  %v562_v7 = vld [vmem:[#allocation6 + $0x430] sm:$0xff] }
  0x92   :  { %1083 = vmatprep.mubr.f32.mxu1 %v2498_v21  ;;  %827 = vmatmul.mubr.f32.gmra.mxu0 %v2500_v22 }
  0x93   :  { %1084 = vmatmul.mubr.f32.gmra.mxu1 %v2502_v23  ;;  %1224 = vmatprep.subr.mxu0 %v439_v36  ;;  %v2520_v36 = vld [vmem:[#allocation3 + $0x1e8] sm:$0xff] }
  0x94   :  { %1481 = vmatprep.subr.mxu1 %v567_v37  ;;  %1225 = vmatpush1.msra.mxu0 %v438_v38  ;;  %2929 = vst [vmem:[#allocation16_spill] sm:$0xff] %v2520_v36  ;;  %v2522_v37 = vld [vmem:[#allocation3 + $0x1f8] sm:$0xff]  ;;  %v2524_v38 = vld [vmem:[#allocation3 + $0x1e0] sm:$0xff] }
  0x95   :  { %1482 = vmatpush1.msra.mxu1 %v566_v39  ;;  %832 = vmatprep.mubr.f32.mxu0 %v2508_v52  ;;  %2930 = vst [vmem:[#allocation17_spill] sm:$0xff] %v2522_v37  ;;  %2931 = vst [vmem:[#allocation18_spill] sm:$0xff] %v2524_v38  ;;  %v2526_v39 = vld [vmem:[#allocation3 + $0x1f0] sm:$0xff]  ;;  %v431_v52 = vld [vmem:[#allocation6 + $0x18] sm:$0xff] }
  0x96   :  { %1089 = vmatprep.mubr.f32.mxu1 %v2510_v53  ;;  %833 = vmatmul.mubr.f32.gmra.mxu0 %v2512_v54  ;;  %2932 = vst [vmem:[#allocation19_spill] sm:$0xff] %v2526_v39  ;;  %v559_v53 = vld [vmem:[#allocation6 + $0x418] sm:$0xff]  ;;  %v430_v54 = vld [vmem:[#allocation6 + $0x10] sm:$0xff] }
  0x97   :  { %1090 = vmatmul.mubr.f32.gmra.mxu1 %v2514_v55  ;;  %1226 = vmatprep.subr.mxu0 %v435_v4  ;;  %v558_v55 = vld [vmem:[#allocation6 + $0x410] sm:$0xff]  ;;  %v2532_v4 = vld [vmem:[#allocation3 + $0x208] sm:$0xff] }
  0x98   :  { %1483 = vmatprep.subr.mxu1 %v563_v5  ;;  %1227 = vmatpush1.msra.mxu0 %v434_v6  ;;  %2933 = vst [vmem:[#allocation20_spill] sm:$0xff] %v2532_v4  ;;  %v2534_v5 = vld [vmem:[#allocation3 + $0x218] sm:$0xff]  ;;  %v2536_v6 = vld [vmem:[#allocation3 + $0x200] sm:$0xff] }
  0x99   :  { %1484 = vmatpush1.msra.mxu1 %v562_v7  ;;  %838 = vmatprep.mubr.f32.mxu0 %v2520_v36  ;;  %2934 = vst [vmem:[#allocation21_spill] sm:$0xff] %v2534_v5  ;;  %2935 = vst [vmem:[#allocation22_spill] sm:$0xff] %v2536_v6  ;;  %v2538_v7 = vld [vmem:[#allocation3 + $0x210] sm:$0xff]  ;;  %v555_v36 = vld [vmem:[#allocation6 + $0x3f8] sm:$0xff] }
  0x9a   :  { %1095 = vmatprep.mubr.f32.mxu1 %v2522_v37  ;;  %839 = vmatmul.mubr.f32.gmra.mxu0 %v2524_v38  ;;  %2936 = vst [vmem:[#allocation23_spill] sm:$0xff] %v2538_v7  ;;  %v683_v37 = vld [vmem:[#allocation6 + $0x7f8] sm:$0xff]  ;;  %v554_v38 = vld [vmem:[#allocation6 + $0x3f0] sm:$0xff] }
  0x9b   :  { %1096 = vmatmul.mubr.f32.gmra.mxu1 %v2526_v39  ;;  %1228 = vmatprep.subr.mxu0 %v431_v52  ;;  %v682_v39 = vld [vmem:[#allocation6 + $0x7f0] sm:$0xff]  ;;  %v2544_v52 = vld [vmem:[#allocation3 + $0x228] sm:$0xff] }
  0x9c   :  { %1485 = vmatprep.subr.mxu1 %v559_v53  ;;  %1229 = vmatpush1.msra.mxu0 %v430_v54  ;;  %2937 = vst [vmem:[#allocation24_spill] sm:$0xff] %v2544_v52  ;;  %v2546_v53 = vld [vmem:[#allocation3 + $0x238] sm:$0xff]  ;;  %v2548_v54 = vld [vmem:[#allocation3 + $0x220] sm:$0xff] }
  0x9d   :  { %1486 = vmatpush1.msra.mxu1 %v558_v55  ;;  %844 = vmatprep.mubr.f32.mxu0 %v2532_v4  ;;  %2938 = vst [vmem:[#allocation25_spill] sm:$0xff] %v2546_v53  ;;  %2939 = vst [vmem:[#allocation26_spill] sm:$0xff] %v2548_v54  ;;  %v2550_v55 = vld [vmem:[#allocation3 + $0x230] sm:$0xff]  ;;  %v551_v4 = vld [vmem:[#allocation6 + $0x3d8] sm:$0xff] }
  0x9e   :  { %1101 = vmatprep.mubr.f32.mxu1 %v2534_v5  ;;  %845 = vmatmul.mubr.f32.gmra.mxu0 %v2536_v6  ;;  %2940 = vst [vmem:[#allocation27_spill] sm:$0xff] %v2550_v55  ;;  %v679_v5 = vld [vmem:[#allocation6 + $0x7d8] sm:$0xff]  ;;  %v550_v6 = vld [vmem:[#allocation6 + $0x3d0] sm:$0xff] }
  0x9f   :  { %1102 = vmatmul.mubr.f32.gmra.mxu1 %v2538_v7  ;;  %1230 = vmatprep.subr.mxu0 %v555_v36  ;;  %v678_v7 = vld [vmem:[#allocation6 + $0x7d0] sm:$0xff]  ;;  %v2556_v36 = vld [vmem:[#allocation3 + $0x248] sm:$0xff] }
  0xa0   :  { %1487 = vmatprep.subr.mxu1 %v683_v37  ;;  %1231 = vmatpush2.msra.mxu0 %v554_v38  ;;  %2941 = vst [vmem:[#allocation28_spill] sm:$0xff] %v2556_v36  ;;  %v2558_v37 = vld [vmem:[#allocation3 + $0x258] sm:$0xff]  ;;  %v2560_v38 = vld [vmem:[#allocation3 + $0x240] sm:$0xff] }
  0xa1   :  { %1488 = vmatpush2.msra.mxu1 %v682_v39  ;;  %850 = vmatprep.mubr.f32.mxu0 %v2544_v52  ;;  %2942 = vst [vmem:[#allocation29_spill] sm:$0xff] %v2558_v37  ;;  %2943 = vst [vmem:[#allocation30_spill] sm:$0xff] %v2560_v38  ;;  %v2562_v39 = vld [vmem:[#allocation3 + $0x250] sm:$0xff]  ;;  %v547_v52 = vld [vmem:[#allocation6 + $0x3b8] sm:$0xff] }
  0xa2   :  { %1107 = vmatprep.mubr.f32.mxu1 %v2546_v53  ;;  %851 = vmatmul.mubr.f32.gmra.mxu0 %v2548_v54  ;;  %2944 = vst [vmem:[#allocation31_spill] sm:$0xff] %v2562_v39  ;;  %v675_v53 = vld [vmem:[#allocation6 + $0x7b8] sm:$0xff]  ;;  %v546_v54 = vld [vmem:[#allocation6 + $0x3b0] sm:$0xff] }
  0xa3   :  { %1108 = vmatmul.mubr.f32.gmra.mxu1 %v2550_v55  ;;  %1232 = vmatprep.subr.mxu0 %v551_v4  ;;  %v674_v55 = vld [vmem:[#allocation6 + $0x7b0] sm:$0xff]  ;;  %v2568_v4 = vld [vmem:[#allocation3 + $0x268] sm:$0xff] }
  0xa4   :  { %1489 = vmatprep.subr.mxu1 %v679_v5  ;;  %1233 = vmatpush2.msra.mxu0 %v550_v6  ;;  %2945 = vst [vmem:[#allocation32_spill] sm:$0xff] %v2568_v4  ;;  %v2570_v5 = vld [vmem:[#allocation3 + $0x278] sm:$0xff]  ;;  %v2572_v6 = vld [vmem:[#allocation3 + $0x260] sm:$0xff] }
  0xa5   :  { %1490 = vmatpush2.msra.mxu1 %v678_v7  ;;  %856 = vmatprep.mubr.f32.mxu0 %v2556_v36  ;;  %2946 = vst [vmem:[#allocation33_spill] sm:$0xff] %v2570_v5  ;;  %2947 = vst [vmem:[#allocation34_spill] sm:$0xff] %v2572_v6  ;;  %v2574_v7 = vld [vmem:[#allocation3 + $0x270] sm:$0xff]  ;;  %v543_v36 = vld [vmem:[#allocation6 + $0x398] sm:$0xff] }
  0xa6   :  { %1113 = vmatprep.mubr.f32.mxu1 %v2558_v37  ;;  %857 = vmatmul.mubr.f32.gmra.mxu0 %v2560_v38  ;;  %2948 = vst [vmem:[#allocation35_spill] sm:$0xff] %v2574_v7  ;;  %v671_v37 = vld [vmem:[#allocation6 + $0x798] sm:$0xff]  ;;  %v542_v38 = vld [vmem:[#allocation6 + $0x390] sm:$0xff] }
  0xa7   :  { %1114 = vmatmul.mubr.f32.gmra.mxu1 %v2562_v39  ;;  %1234 = vmatprep.subr.mxu0 %v547_v52  ;;  %v670_v39 = vld [vmem:[#allocation6 + $0x790] sm:$0xff]  ;;  %v2580_v52 = vld [vmem:[#allocation3 + $0x288] sm:$0xff] }
  0xa8   :  { %1491 = vmatprep.subr.mxu1 %v675_v53  ;;  %1235 = vmatpush2.msra.mxu0 %v546_v54  ;;  %2949 = vst [vmem:[#allocation36_spill] sm:$0xff] %v2580_v52  ;;  %v2582_v53 = vld [vmem:[#allocation3 + $0x298] sm:$0xff]  ;;  %v2584_v54 = vld [vmem:[#allocation3 + $0x280] sm:$0xff] }
  0xa9   :  { %1492 = vmatpush2.msra.mxu1 %v674_v55  ;;  %862 = vmatprep.mubr.f32.mxu0 %v2568_v4  ;;  %2950 = vst [vmem:[#allocation37_spill] sm:$0xff] %v2582_v53  ;;  %2951 = vst [vmem:[#allocation38_spill] sm:$0xff] %v2584_v54  ;;  %v2586_v55 = vld [vmem:[#allocation3 + $0x290] sm:$0xff]  ;;  %v539_v4 = vld [vmem:[#allocation6 + $0x378] sm:$0xff] }
  0xaa   :  { %1119 = vmatprep.mubr.f32.mxu1 %v2570_v5  ;;  %863 = vmatmul.mubr.f32.gmra.mxu0 %v2572_v6  ;;  %2952 = vst [vmem:[#allocation39_spill] sm:$0xff] %v2586_v55  ;;  %v667_v5 = vld [vmem:[#allocation6 + $0x778] sm:$0xff]  ;;  %v538_v6 = vld [vmem:[#allocation6 + $0x370] sm:$0xff] }
  0xab   :  { %1120 = vmatmul.mubr.f32.gmra.mxu1 %v2574_v7  ;;  %1236 = vmatprep.subr.mxu0 %v543_v36  ;;  %v666_v7 = vld [vmem:[#allocation6 + $0x770] sm:$0xff]  ;;  %v2592_v36 = vld [vmem:[#allocation3 + $0x2a8] sm:$0xff] }
  0xac   :  { %1493 = vmatprep.subr.mxu1 %v671_v37  ;;  %1237 = vmatpush2.msra.mxu0 %v542_v38  ;;  %2953 = vst [vmem:[#allocation40_spill] sm:$0xff] %v2592_v36  ;;  %v2594_v37 = vld [vmem:[#allocation3 + $0x2b8] sm:$0xff]  ;;  %v2596_v38 = vld [vmem:[#allocation3 + $0x2a0] sm:$0xff] }
  0xad   :  { %1494 = vmatpush2.msra.mxu1 %v670_v39  ;;  %868 = vmatprep.mubr.f32.mxu0 %v2580_v52  ;;  %2954 = vst [vmem:[#allocation41_spill] sm:$0xff] %v2594_v37  ;;  %2955 = vst [vmem:[#allocation42_spill] sm:$0xff] %v2596_v38  ;;  %v2598_v39 = vld [vmem:[#allocation3 + $0x2b0] sm:$0xff]  ;;  %v535_v52 = vld [vmem:[#allocation6 + $0x358] sm:$0xff] }
  0xae   :  { %1125 = vmatprep.mubr.f32.mxu1 %v2582_v53  ;;  %869 = vmatmul.mubr.f32.gmra.mxu0 %v2584_v54  ;;  %2956 = vst [vmem:[#allocation43_spill] sm:$0xff] %v2598_v39  ;;  %v663_v53 = vld [vmem:[#allocation6 + $0x758] sm:$0xff]  ;;  %v534_v54 = vld [vmem:[#allocation6 + $0x350] sm:$0xff] }
  0xaf   :  { %1126 = vmatmul.mubr.f32.gmra.mxu1 %v2586_v55  ;;  %1238 = vmatprep.subr.mxu0 %v539_v4  ;;  %v662_v55 = vld [vmem:[#allocation6 + $0x750] sm:$0xff]  ;;  %v2604_v4 = vld [vmem:[#allocation3 + $0x2c8] sm:$0xff] }
  0xb0   :  { %1495 = vmatprep.subr.mxu1 %v667_v5  ;;  %1239 = vmatpush2.msra.mxu0 %v538_v6  ;;  %2957 = vst [vmem:[#allocation44_spill] sm:$0xff] %v2604_v4  ;;  %v2606_v5 = vld [vmem:[#allocation3 + $0x2d8] sm:$0xff]  ;;  %v2608_v6 = vld [vmem:[#allocation3 + $0x2c0] sm:$0xff] }
  0xb1   :  { %1496 = vmatpush2.msra.mxu1 %v666_v7  ;;  %874 = vmatprep.mubr.f32.mxu0 %v2592_v36  ;;  %2958 = vst [vmem:[#allocation45_spill] sm:$0xff] %v2606_v5  ;;  %2959 = vst [vmem:[#allocation46_spill] sm:$0xff] %v2608_v6  ;;  %v2610_v7 = vld [vmem:[#allocation3 + $0x2d0] sm:$0xff]  ;;  %v531_v36 = vld [vmem:[#allocation6 + $0x338] sm:$0xff] }
  0xb2   :  { %1131 = vmatprep.mubr.f32.mxu1 %v2594_v37  ;;  %875 = vmatmul.mubr.f32.gmra.mxu0 %v2596_v38  ;;  %2960 = vst [vmem:[#allocation47_spill] sm:$0xff] %v2610_v7  ;;  %v659_v37 = vld [vmem:[#allocation6 + $0x738] sm:$0xff]  ;;  %v530_v38 = vld [vmem:[#allocation6 + $0x330] sm:$0xff] }
  0xb3   :  { %1132 = vmatmul.mubr.f32.gmra.mxu1 %v2598_v39  ;;  %1240 = vmatprep.subr.mxu0 %v535_v52  ;;  %v658_v39 = vld [vmem:[#allocation6 + $0x730] sm:$0xff]  ;;  %v2616_v52 = vld [vmem:[#allocation3 + $0x2e8] sm:$0xff] }
  0xb4   :  { %1497 = vmatprep.subr.mxu1 %v663_v53  ;;  %1241 = vmatpush2.msra.mxu0 %v534_v54  ;;  %2961 = vst [vmem:[#allocation48_spill] sm:$0xff] %v2616_v52  ;;  %v2618_v53 = vld [vmem:[#allocation3 + $0x2f8] sm:$0xff]  ;;  %v2620_v54 = vld [vmem:[#allocation3 + $0x2e0] sm:$0xff] }
  0xb5   :  { %1498 = vmatpush2.msra.mxu1 %v662_v55  ;;  %880 = vmatprep.mubr.f32.mxu0 %v2604_v4  ;;  %2962 = vst [vmem:[#allocation49_spill] sm:$0xff] %v2618_v53  ;;  %2963 = vst [vmem:[#allocation50_spill] sm:$0xff] %v2620_v54  ;;  %v2622_v55 = vld [vmem:[#allocation3 + $0x2f0] sm:$0xff]  ;;  %v527_v4 = vld [vmem:[#allocation6 + $0x318] sm:$0xff] }
  0xb6   :  { %1137 = vmatprep.mubr.f32.mxu1 %v2606_v5  ;;  %881 = vmatmul.mubr.f32.gmra.mxu0 %v2608_v6  ;;  %2964 = vst [vmem:[#allocation51_spill] sm:$0xff] %v2622_v55  ;;  %v655_v5 = vld [vmem:[#allocation6 + $0x718] sm:$0xff]  ;;  %v526_v6 = vld [vmem:[#allocation6 + $0x310] sm:$0xff] }
  0xb7   :  { %1138 = vmatmul.mubr.f32.gmra.mxu1 %v2610_v7  ;;  %1242 = vmatprep.subr.mxu0 %v531_v36  ;;  %v654_v7 = vld [vmem:[#allocation6 + $0x710] sm:$0xff]  ;;  %v2628_v36 = vld [vmem:[#allocation3 + $0x308] sm:$0xff] }
  0xb8   :  { %1499 = vmatprep.subr.mxu1 %v659_v37  ;;  %1243 = vmatpush2.msra.mxu0 %v530_v38  ;;  %2965 = vst [vmem:[#allocation52_spill] sm:$0xff] %v2628_v36  ;;  %v2630_v37 = vld [vmem:[#allocation3 + $0x318] sm:$0xff]  ;;  %v2632_v38 = vld [vmem:[#allocation3 + $0x300] sm:$0xff] }
  0xb9   :  { %1500 = vmatpush2.msra.mxu1 %v658_v39  ;;  %886 = vmatprep.mubr.f32.mxu0 %v2616_v52  ;;  %2966 = vst [vmem:[#allocation53_spill] sm:$0xff] %v2630_v37  ;;  %2967 = vst [vmem:[#allocation54_spill] sm:$0xff] %v2632_v38  ;;  %v2634_v39 = vld [vmem:[#allocation3 + $0x310] sm:$0xff]  ;;  %v523_v52 = vld [vmem:[#allocation6 + $0x2f8] sm:$0xff] }
  0xba   :  { %1143 = vmatprep.mubr.f32.mxu1 %v2618_v53  ;;  %887 = vmatmul.mubr.f32.gmra.mxu0 %v2620_v54  ;;  %2968 = vst [vmem:[#allocation55_spill] sm:$0xff] %v2634_v39  ;;  %v651_v53 = vld [vmem:[#allocation6 + $0x6f8] sm:$0xff]  ;;  %v522_v54 = vld [vmem:[#allocation6 + $0x2f0] sm:$0xff] }
  0xbb   :  { %1144 = vmatmul.mubr.f32.gmra.mxu1 %v2622_v55  ;;  %1244 = vmatprep.subr.mxu0 %v527_v4  ;;  %v650_v55 = vld [vmem:[#allocation6 + $0x6f0] sm:$0xff]  ;;  %v2640_v4 = vld [vmem:[#allocation3 + $0x328] sm:$0xff] }
  0xbc   :  { %1501 = vmatprep.subr.mxu1 %v655_v5  ;;  %1245 = vmatpush2.msra.mxu0 %v526_v6  ;;  %2969 = vst [vmem:[#allocation56_spill] sm:$0xff] %v2640_v4  ;;  %v2642_v5 = vld [vmem:[#allocation3 + $0x338] sm:$0xff]  ;;  %v2644_v6 = vld [vmem:[#allocation3 + $0x320] sm:$0xff] }
  0xbd   :  { %1502 = vmatpush2.msra.mxu1 %v654_v7  ;;  %892 = vmatprep.mubr.f32.mxu0 %v2628_v36  ;;  %2970 = vst [vmem:[#allocation57_spill] sm:$0xff] %v2642_v5  ;;  %2971 = vst [vmem:[#allocation58_spill] sm:$0xff] %v2644_v6  ;;  %v2646_v7 = vld [vmem:[#allocation3 + $0x330] sm:$0xff]  ;;  %v519_v36 = vld [vmem:[#allocation6 + $0x2d8] sm:$0xff] }
  0xbe   :  { %1149 = vmatprep.mubr.f32.mxu1 %v2630_v37  ;;  %893 = vmatmul.mubr.f32.gmra.mxu0 %v2632_v38  ;;  %2972 = vst [vmem:[#allocation59_spill] sm:$0xff] %v2646_v7  ;;  %v647_v37 = vld [vmem:[#allocation6 + $0x6d8] sm:$0xff]  ;;  %v518_v38 = vld [vmem:[#allocation6 + $0x2d0] sm:$0xff] }
  0xbf   :  { %1150 = vmatmul.mubr.f32.gmra.mxu1 %v2634_v39  ;;  %1246 = vmatprep.subr.mxu0 %v523_v52  ;;  %v646_v39 = vld [vmem:[#allocation6 + $0x6d0] sm:$0xff]  ;;  %v2652_v52 = vld [vmem:[#allocation3 + $0x348] sm:$0xff] }
  0xc0   :  { %1503 = vmatprep.subr.mxu1 %v651_v53  ;;  %1247 = vmatpush2.msra.mxu0 %v522_v54  ;;  %2973 = vst [vmem:[#allocation60_spill] sm:$0xff] %v2652_v52  ;;  %v2654_v53 = vld [vmem:[#allocation3 + $0x358] sm:$0xff]  ;;  %v2656_v54 = vld [vmem:[#allocation3 + $0x340] sm:$0xff] }
  0xc1   :  { %1504 = vmatpush2.msra.mxu1 %v650_v55  ;;  %898 = vmatprep.mubr.f32.mxu0 %v2640_v4  ;;  %2974 = vst [vmem:[#allocation61_spill] sm:$0xff] %v2654_v53  ;;  %2975 = vst [vmem:[#allocation62_spill] sm:$0xff] %v2656_v54  ;;  %v2658_v55 = vld [vmem:[#allocation3 + $0x350] sm:$0xff]  ;;  %v515_v4 = vld [vmem:[#allocation6 + $0x2b8] sm:$0xff] }
  0xc2   :  { %1155 = vmatprep.mubr.f32.mxu1 %v2642_v5  ;;  %899 = vmatmul.mubr.f32.gmra.mxu0 %v2644_v6  ;;  %2976 = vst [vmem:[#allocation63_spill] sm:$0xff] %v2658_v55  ;;  %v643_v5 = vld [vmem:[#allocation6 + $0x6b8] sm:$0xff]  ;;  %v514_v6 = vld [vmem:[#allocation6 + $0x2b0] sm:$0xff] }
  0xc3   :  { %1156 = vmatmul.mubr.f32.gmra.mxu1 %v2646_v7  ;;  %1248 = vmatprep.subr.mxu0 %v519_v36  ;;  %v642_v7 = vld [vmem:[#allocation6 + $0x6b0] sm:$0xff]  ;;  %v2664_v36 = vld [vmem:[#allocation3 + $0x368] sm:$0xff] }
  0xc4   :  { %1505 = vmatprep.subr.mxu1 %v647_v37  ;;  %1249 = vmatpush2.msra.mxu0 %v518_v38  ;;  %2977 = vst [vmem:[#allocation64_spill] sm:$0xff] %v2664_v36  ;;  %v2666_v37 = vld [vmem:[#allocation3 + $0x378] sm:$0xff]  ;;  %v2668_v38 = vld [vmem:[#allocation3 + $0x360] sm:$0xff] }
  0xc5   :  { %1506 = vmatpush2.msra.mxu1 %v646_v39  ;;  %904 = vmatprep.mubr.f32.mxu0 %v2652_v52  ;;  %2978 = vst [vmem:[#allocation65_spill] sm:$0xff] %v2666_v37  ;;  %2979 = vst [vmem:[#allocation66_spill] sm:$0xff] %v2668_v38  ;;  %v2670_v39 = vld [vmem:[#allocation3 + $0x370] sm:$0xff]  ;;  %v511_v52 = vld [vmem:[#allocation6 + $0x298] sm:$0xff] }
  0xc6   :  { %1161 = vmatprep.mubr.f32.mxu1 %v2654_v53  ;;  %905 = vmatmul.mubr.f32.gmra.mxu0 %v2656_v54  ;;  %2980 = vst [vmem:[#allocation67_spill] sm:$0xff] %v2670_v39  ;;  %v639_v53 = vld [vmem:[#allocation6 + $0x698] sm:$0xff]  ;;  %v510_v54 = vld [vmem:[#allocation6 + $0x290] sm:$0xff] }
  0xc7   :  { %1162 = vmatmul.mubr.f32.gmra.mxu1 %v2658_v55  ;;  %1250 = vmatprep.subr.mxu0 %v515_v4  ;;  %v638_v55 = vld [vmem:[#allocation6 + $0x690] sm:$0xff]  ;;  %v2676_v4 = vld [vmem:[#allocation3 + $0x388] sm:$0xff] }
  0xc8   :  { %1507 = vmatprep.subr.mxu1 %v643_v5  ;;  %1251 = vmatpush2.msra.mxu0 %v514_v6  ;;  %2981 = vst [vmem:[#allocation68_spill] sm:$0xff] %v2676_v4  ;;  %v2678_v5 = vld [vmem:[#allocation3 + $0x398] sm:$0xff]  ;;  %v2680_v6 = vld [vmem:[#allocation3 + $0x380] sm:$0xff] }
  0xc9   :  { %1508 = vmatpush2.msra.mxu1 %v642_v7  ;;  %910 = vmatprep.mubr.f32.mxu0 %v2664_v36  ;;  %2982 = vst [vmem:[#allocation69_spill] sm:$0xff] %v2678_v5  ;;  %2983 = vst [vmem:[#allocation70_spill] sm:$0xff] %v2680_v6  ;;  %v2682_v7 = vld [vmem:[#allocation3 + $0x390] sm:$0xff]  ;;  %v507_v36 = vld [vmem:[#allocation6 + $0x278] sm:$0xff] }
  0xca   :  { %1167 = vmatprep.mubr.f32.mxu1 %v2666_v37  ;;  %911 = vmatmul.mubr.f32.gmra.mxu0 %v2668_v38  ;;  %2984 = vst [vmem:[#allocation71_spill] sm:$0xff] %v2682_v7  ;;  %v635_v37 = vld [vmem:[#allocation6 + $0x678] sm:$0xff]  ;;  %v506_v38 = vld [vmem:[#allocation6 + $0x270] sm:$0xff] }
  0xcb   :  { %1168 = vmatmul.mubr.f32.gmra.mxu1 %v2670_v39  ;;  %1252 = vmatprep.subr.mxu0 %v511_v52  ;;  %v634_v39 = vld [vmem:[#allocation6 + $0x670] sm:$0xff]  ;;  %v2688_v52 = vld [vmem:[#allocation3 + $0x3a8] sm:$0xff] }
  0xcc   :  { %1509 = vmatprep.subr.mxu1 %v639_v53  ;;  %1253 = vmatpush2.msra.mxu0 %v510_v54  ;;  %2985 = vst [vmem:[#allocation72_spill] sm:$0xff] %v2688_v52  ;;  %v2690_v53 = vld [vmem:[#allocation3 + $0x3b8] sm:$0xff]  ;;  %v2692_v54 = vld [vmem:[#allocation3 + $0x3a0] sm:$0xff] }
  0xcd   :  { %1510 = vmatpush2.msra.mxu1 %v638_v55  ;;  %916 = vmatprep.mubr.f32.mxu0 %v2676_v4  ;;  %2986 = vst [vmem:[#allocation73_spill] sm:$0xff] %v2690_v53  ;;  %2987 = vst [vmem:[#allocation74_spill] sm:$0xff] %v2692_v54  ;;  %v2694_v55 = vld [vmem:[#allocation3 + $0x3b0] sm:$0xff]  ;;  %v503_v4 = vld [vmem:[#allocation6 + $0x258] sm:$0xff] }
  0xce   :  { %1173 = vmatprep.mubr.f32.mxu1 %v2678_v5  ;;  %917 = vmatmul.mubr.f32.gmra.mxu0 %v2680_v6  ;;  %2988 = vst [vmem:[#allocation75_spill] sm:$0xff] %v2694_v55  ;;  %v631_v5 = vld [vmem:[#allocation6 + $0x658] sm:$0xff]  ;;  %v502_v6 = vld [vmem:[#allocation6 + $0x250] sm:$0xff] }
  0xcf   :  { %1174 = vmatmul.mubr.f32.gmra.mxu1 %v2682_v7  ;;  %1254 = vmatprep.subr.mxu0 %v507_v36  ;;  %v630_v7 = vld [vmem:[#allocation6 + $0x650] sm:$0xff]  ;;  %v2700_v36 = vld [vmem:[#allocation3 + $0x3c8] sm:$0xff] }
  0xd0   :  { %1511 = vmatprep.subr.mxu1 %v635_v37  ;;  %1255 = vmatpush2.msra.mxu0 %v506_v38  ;;  %2989 = vst [vmem:[#allocation76_spill] sm:$0xff] %v2700_v36  ;;  %v2702_v37 = vld [vmem:[#allocation3 + $0x3d8] sm:$0xff]  ;;  %v2704_v38 = vld [vmem:[#allocation3 + $0x3c0] sm:$0xff] }
  0xd1   :  { %1512 = vmatpush2.msra.mxu1 %v634_v39  ;;  %922 = vmatprep.mubr.f32.mxu0 %v2688_v52  ;;  %2990 = vst [vmem:[#allocation77_spill] sm:$0xff] %v2702_v37  ;;  %2991 = vst [vmem:[#allocation78_spill] sm:$0xff] %v2704_v38  ;;  %v2706_v39 = vld [vmem:[#allocation3 + $0x3d0] sm:$0xff]  ;;  %v499_v52 = vld [vmem:[#allocation6 + $0x238] sm:$0xff] }
  0xd2   :  { %1179 = vmatprep.mubr.f32.mxu1 %v2690_v53  ;;  %923 = vmatmul.mubr.f32.gmra.mxu0 %v2692_v54  ;;  %2992 = vst [vmem:[#allocation79_spill] sm:$0xff] %v2706_v39  ;;  %v627_v53 = vld [vmem:[#allocation6 + $0x638] sm:$0xff]  ;;  %v498_v54 = vld [vmem:[#allocation6 + $0x230] sm:$0xff] }
  0xd3   :  { %1180 = vmatmul.mubr.f32.gmra.mxu1 %v2694_v55  ;;  %1256 = vmatprep.subr.mxu0 %v503_v4  ;;  %v626_v55 = vld [vmem:[#allocation6 + $0x630] sm:$0xff]  ;;  %v2712_v4 = vld [vmem:[#allocation3 + $0x3e8] sm:$0xff] }
  0xd4   :  { %1513 = vmatprep.subr.mxu1 %v631_v5  ;;  %1257 = vmatpush2.msra.mxu0 %v502_v6  ;;  %v2714_v5 = vld [vmem:[#allocation3 + $0x3f8] sm:$0xff]  ;;  %v2716_v6 = vld [vmem:[#allocation3 + $0x3e0] sm:$0xff] }
  0xd5   :  { %1514 = vmatpush2.msra.mxu1 %v630_v7  ;;  %928 = vmatprep.mubr.f32.mxu0 %v2700_v36  ;;  %v2718_v7 = vld [vmem:[#allocation3 + $0x3f0] sm:$0xff]  ;;  %v495_v36 = vld [vmem:[#allocation6 + $0x218] sm:$0xff] }
  0xd6   :  { %1185 = vmatprep.mubr.f32.mxu1 %v2702_v37  ;;  %929 = vmatmul.mubr.f32.gmra.mxu0 %v2704_v38  ;;  %v623_v37 = vld [vmem:[#allocation6 + $0x618] sm:$0xff]  ;;  %v494_v38 = vld [vmem:[#allocation6 + $0x210] sm:$0xff] }
  0xd7   :  { %1186 = vmatmul.mubr.f32.gmra.mxu1 %v2706_v39  ;;  %1258 = vmatprep.subr.mxu0 %v499_v52  ;;  %v622_v39 = vld [vmem:[#allocation6 + $0x610] sm:$0xff]  ;;  %v2250_v52 = vld [vmem:[#allocation3 + $0x8] sm:$0xff] }
  0xd8   :  { %1515 = vmatprep.subr.mxu1 %v627_v53  ;;  %1259 = vmatpush2.msra.mxu0 %v498_v54  ;;  %v2251_v53 = vld [vmem:[#allocation3 + $0x18] sm:$0xff]  ;;  %v2252_v54 = vld [vmem:[#allocation3] sm:$0xff] }
  0xd9   :  { %1516 = vmatpush2.msra.mxu1 %v626_v55  ;;  %934 = vmatprep.mubr.f32.mxu0 %v2712_v4  ;;  %v2253_v55 = vld [vmem:[#allocation3 + $0x10] sm:$0xff] }
  0xda   :  { %1191 = vmatprep.mubr.f32.mxu1 %v2714_v5  ;;  %935 = vmatmul.mubr.f32.gmra.mxu0 %v2716_v6 }
  0xdb   :  { %1192 = vmatmul.mubr.f32.gmra.mxu1 %v2718_v7  ;;  %1260 = vmatprep.subr.mxu0 %v495_v36  ;;  %v3019_v36 = vld [vmem:[#allocation38_spill] sm:$0xff] }
  0xdc   :  { %1517 = vmatprep.subr.mxu1 %v623_v37  ;;  %1261 = vmatpush2.msra.mxu0 %v494_v38  ;;  %v3020_v37 = vld [vmem:[#allocation39_spill] sm:$0xff] }
  0xdd   :  { %1518 = vmatpush2.msra.mxu1 %v622_v39  ;;  %1262 = vmatprep.mubr.f32.mxu0 %v2250_v52  ;;  %v3021_v39 = vld [vmem:[#allocation40_spill] sm:$0xff]  ;;  %v3022_v52 = vld [vmem:[#allocation41_spill] sm:$0xff] }
  0xde   :  { %1519 = vmatprep.mubr.f32.mxu1 %v2251_v53  ;;  %1263 = vmatmul.mubr.f32.vlgmr.msra.gmra.mxu0 %v2252_v54 }
  0xdf   :  { %1520 = vmatmul.mubr.f32.vlgmr.msra.gmra.mxu1 %v2253_v55  ;;  %1268 = vmatprep.mubr.f32.mxu0 %v2352_v8  ;;  %v2993_v8 = vld [vmem:[#allocation12_spill] sm:$0xff] }
  0xe0   :  { %1525 = vmatprep.mubr.f32.mxu1 %v2354_v9  ;;  %v2994_v9 = vld [vmem:[#allocation13_spill] sm:$0xff] }
  0xe2   :  { %1269 = vmatmul.mubr.f32.gmra.mxu0 %v2356_v10  ;;  %v2995_v10 = vld [vmem:[#allocation14_spill] sm:$0xff] }
  0xe3   :  { %1526 = vmatmul.mubr.f32.gmra.mxu1 %v2358_v11  ;;  %1274 = vmatprep.mubr.f32.mxu0 %v2364_v16  ;;  %v2996_v11 = vld [vmem:[#allocation15_spill] sm:$0xff]  ;;  %v2997_v16 = vld [vmem:[#allocation16_spill] sm:$0xff] }
  0xe4   :  { %1531 = vmatprep.mubr.f32.mxu1 %v2366_v17  ;;  %v2998_v17 = vld [vmem:[#allocation17_spill] sm:$0xff] }
  0xe6   :  { %1275 = vmatmul.mubr.f32.gmra.mxu0 %v2368_v18  ;;  %v2999_v18 = vld [vmem:[#allocation18_spill] sm:$0xff] }
  0xe7   :  { %1532 = vmatmul.mubr.f32.gmra.mxu1 %v2370_v19  ;;  %1280 = vmatprep.mubr.f32.mxu0 %v2376_v24  ;;  %v3000_v19 = vld [vmem:[#allocation19_spill] sm:$0xff]  ;;  %v3001_v24 = vld [vmem:[#allocation20_spill] sm:$0xff] }
  0xe8   :  { %1537 = vmatprep.mubr.f32.mxu1 %v2378_v25  ;;  %v3002_v25 = vld [vmem:[#allocation21_spill] sm:$0xff] }
  0xea   :  { %1281 = vmatmul.mubr.f32.gmra.mxu0 %v2380_v26 }
  0xeb   :  { %1538 = vmatmul.mubr.f32.gmra.mxu1 %v2382_v27  ;;  %1286 = vmatprep.mubr.f32.mxu0 %v2388_v32  ;;  %v3003_v32 = vld [vmem:[#allocation22_spill] sm:$0xff] }
  0xec   :  { %1543 = vmatprep.mubr.f32.mxu1 %v2390_v33  ;;  %v3004_v33 = vld [vmem:[#allocation23_spill] sm:$0xff] }
  0xee   :  { %1287 = vmatmul.mubr.f32.gmra.mxu0 %v2392_v34 }
  0xef   :  { %1544 = vmatmul.mubr.f32.gmra.mxu1 %v2394_v35  ;;  %1292 = vmatprep.mubr.f32.mxu0 %v2400_v40  ;;  %v3005_v35 = vld [vmem:[#allocation24_spill] sm:$0xff]  ;;  %v3006_v40 = vld [vmem:[#allocation25_spill] sm:$0xff] }
  0xf0   :  { %1549 = vmatprep.mubr.f32.mxu1 %v2402_v41 }
  0xf2   :  { %1293 = vmatmul.mubr.f32.gmra.mxu0 %v2404_v42 }
  0xf3   :  { %1550 = vmatmul.mubr.f32.gmra.mxu1 %v2406_v43  ;;  %1298 = vmatprep.mubr.f32.mxu0 %v2412_v48 }
  0xf4   :  { %1555 = vmatprep.mubr.f32.mxu1 %v2414_v49 }
  0xf6   :  { %1299 = vmatmul.mubr.f32.gmra.mxu0 %v2416_v50  ;;  %v3007_v50 = vld [vmem:[#allocation26_spill] sm:$0xff] }
  0xf7   :  { %1556 = vmatmul.mubr.f32.gmra.mxu1 %v2418_v51  ;;  %1304 = vmatprep.mubr.f32.mxu0 %v2424_v56  ;;  %v3008_v51 = vld [vmem:[#allocation27_spill] sm:$0xff] }
  0xf8   :  { %1561 = vmatprep.mubr.f32.mxu1 %v2426_v57  ;;  %v3009_v57 = vld [vmem:[#allocation28_spill] sm:$0xff] }
  0xfa   :  { %1305 = vmatmul.mubr.f32.gmra.mxu0 %v2428_v58  ;;  %v3010_v58 = vld [vmem:[#allocation29_spill] sm:$0xff] }
  0xfb   :  { %1562 = vmatmul.mubr.f32.gmra.mxu1 %v2430_v59  ;;  %1310 = vmatprep.mubr.f32.mxu0 %v2436_v0 }
  0xfc   :  { %1567 = vmatprep.mubr.f32.mxu1 %v2438_v1 }
  0xfe   :  { %1311 = vmatmul.mubr.f32.gmra.mxu0 %v2440_v2 }
  0xff   :  { %1568 = vmatmul.mubr.f32.gmra.mxu1 %v2442_v3  ;;  %1316 = vmatprep.mubr.f32.mxu0 %v2448_v12  ;;  %v3011_v12 = vld [vmem:[#allocation30_spill] sm:$0xff] }
 0x100   :  { %1573 = vmatprep.mubr.f32.mxu1 %v2450_v13  ;;  %v3012_v13 = vld [vmem:[#allocation31_spill] sm:$0xff] }
 0x102   :  { %1317 = vmatmul.mubr.f32.gmra.mxu0 %v2452_v14 }
 0x103   :  { %1574 = vmatmul.mubr.f32.gmra.mxu1 %v2454_v15  ;;  %1322 = vmatprep.mubr.f32.mxu0 %v2460_v28  ;;  %v3013_v15 = vld [vmem:[#allocation32_spill] sm:$0xff]  ;;  %v3014_v28 = vld [vmem:[#allocation33_spill] sm:$0xff] }
 0x104   :  { %1579 = vmatprep.mubr.f32.mxu1 %v2462_v29 }
 0x106   :  { %1323 = vmatmul.mubr.f32.gmra.mxu0 %v2464_v30 }
 0x107   :  { %1580 = vmatmul.mubr.f32.gmra.mxu1 %v2466_v31  ;;  %1328 = vmatprep.mubr.f32.mxu0 %v2472_v44 }
 0x108   :  { %1585 = vmatprep.mubr.f32.mxu1 %v2474_v45 }
 0x10a   :  { %1329 = vmatmul.mubr.f32.gmra.mxu0 %v2476_v46  ;;  %v3015_v46 = vld [vmem:[#allocation34_spill] sm:$0xff] }
 0x10b   :  { %1586 = vmatmul.mubr.f32.gmra.mxu1 %v2478_v47  ;;  %1334 = vmatprep.mubr.f32.mxu0 %v2484_v60  ;;  %v3016_v47 = vld [vmem:[#allocation35_spill] sm:$0xff] }
 0x10c   :  { %1591 = vmatprep.mubr.f32.mxu1 %v2486_v61  ;;  %v3017_v61 = vld [vmem:[#allocation36_spill] sm:$0xff] }
 0x10e   :  { %1335 = vmatmul.mubr.f32.gmra.mxu0 %v2488_v62  ;;  %v3018_v62 = vld [vmem:[#allocation37_spill] sm:$0xff] }
 0x10f   :  { %1592 = vmatmul.mubr.f32.gmra.mxu1 %v2490_v63  ;;  %1340 = vmatprep.mubr.f32.mxu0 %v2496_v20 }
 0x110   :  { %1597 = vmatprep.mubr.f32.mxu1 %v2498_v21 }
 0x112   :  { %1341 = vmatmul.mubr.f32.gmra.mxu0 %v2500_v22 }
 0x113   :  { %1598 = vmatmul.mubr.f32.gmra.mxu1 %v2502_v23  ;;  %1346 = vmatprep.mubr.f32.mxu0 %v2993_v8 }
 0x114   :  { %1603 = vmatprep.mubr.f32.mxu1 %v2994_v9 }
 0x116   :  { %1347 = vmatmul.mubr.f32.gmra.mxu0 %v2995_v10  ;;  %v3023_v10 = vld [vmem:[#allocation42_spill] sm:$0xff] }
 0x117   :  { %1604 = vmatmul.mubr.f32.gmra.mxu1 %v2996_v11  ;;  %1352 = vmatprep.mubr.f32.mxu0 %v2997_v16  ;;  %v3024_v11 = vld [vmem:[#allocation43_spill] sm:$0xff] }
 0x118   :  { %1609 = vmatprep.mubr.f32.mxu1 %v2998_v17  ;;  %v3025_v17 = vld [vmem:[#allocation44_spill] sm:$0xff] }
 0x11a   :  { %1353 = vmatmul.mubr.f32.gmra.mxu0 %v2999_v18  ;;  %v3026_v18 = vld [vmem:[#allocation45_spill] sm:$0xff] }
 0x11b   :  { %1610 = vmatmul.mubr.f32.gmra.mxu1 %v3000_v19  ;;  %1358 = vmatprep.mubr.f32.mxu0 %v3001_v24 }
 0x11c   :  { %1615 = vmatprep.mubr.f32.mxu1 %v3002_v25 }
 0x11e   :  { %v750_v26 = vpop.f32.mrf.mxu0  ;;  %1359 = vmatmul.mubr.f32.gmra.mxu0 %v3003_v32  ;;  %v3027_v32 = vld [vmem:[#allocation46_spill] sm:$0xff] }
 0x11f   :  { %v1007_v27 = vpop.f32.mrf.mxu1  ;;  %1616 = vmatmul.mubr.f32.gmra.mxu1 %v3004_v33  ;;  %1364 = vmatprep.mubr.f32.mxu0 %v3005_v35  ;;  %v3028_v33 = vld [vmem:[#allocation47_spill] sm:$0xff]  ;;  %v3029_v35 = vld [vmem:[#allocation48_spill] sm:$0xff] }
 0x120   :  { %v1008_v34 = vadd.f32 %v1007_v27, %v750_v26  ;;  %1621 = vmatprep.mubr.f32.mxu1 %v3006_v40  ;;  %v752_v41 = vpop.f32.mrf.mxu0  ;;  %v3030_v40 = vld [vmem:[#allocation49_spill] sm:$0xff] }
 0x121   :  { %v1009_v42 = vpop.f32.mrf.mxu1 }
 0x122   :  { %2099 = vst [vmem:[#allocation8] sm:$0xff] %v1008_v34  ;;  %v1010_v43 = vadd.f32 %v1009_v42, %v752_v41  ;;  %v756_v48 = vpop.f32.mrf.mxu0  ;;  %1365 = vmatmul.mubr.f32.gmra.mxu0 %v3007_v50  ;;  %v3031_v50 = vld [vmem:[#allocation50_spill] sm:$0xff] }
 0x123   :  { %v1013_v49 = vpop.f32.mrf.mxu1  ;;  %1622 = vmatmul.mubr.f32.gmra.mxu1 %v3008_v51  ;;  %1370 = vmatprep.mubr.f32.mxu0 %v3009_v57  ;;  %v3032_v51 = vld [vmem:[#allocation51_spill] sm:$0xff]  ;;  %v3033_v57 = vld [vmem:[#allocation52_spill] sm:$0xff] }
 0x124   :  { %2100 = vst [vmem:[#allocation8 + $0x8] sm:$0xff] %v1010_v43  ;;  %v1014_v56 = vadd.f32 %v1013_v49, %v756_v48  ;;  %1627 = vmatprep.mubr.f32.mxu1 %v3010_v58  ;;  %v758_v59 = vpop.f32.mrf.mxu0  ;;  %v3034_v58 = vld [vmem:[#allocation53_spill] sm:$0xff] }
 0x125   :  { %v1015_v0 = vpop.f32.mrf.mxu1 }
 0x126   :  { %2103 = vst [vmem:[#allocation8 + $0x20] sm:$0xff] %v1014_v56  ;;  %v1016_v1 = vadd.f32 %v1015_v0, %v758_v59  ;;  %v762_v2 = vpop.f32.mrf.mxu0  ;;  %1371 = vmatmul.mubr.f32.gmra.mxu0 %v3011_v12  ;;  %v3035_v12 = vld [vmem:[#allocation54_spill] sm:$0xff] }
 0x127   :  { %v1019_v3 = vpop.f32.mrf.mxu1  ;;  %1628 = vmatmul.mubr.f32.gmra.mxu1 %v3012_v13  ;;  %1376 = vmatprep.mubr.f32.mxu0 %v3013_v15  ;;  %v3036_v13 = vld [vmem:[#allocation55_spill] sm:$0xff]  ;;  %v3037_v15 = vld [vmem:[#allocation56_spill] sm:$0xff] }
 0x128   :  { %2104 = vst [vmem:[#allocation8 + $0x28] sm:$0xff] %v1016_v1  ;;  %v1020_v14 = vadd.f32 %v1019_v3, %v762_v2  ;;  %1633 = vmatprep.mubr.f32.mxu1 %v3014_v28  ;;  %v764_v29 = vpop.f32.mrf.mxu0  ;;  %v3038_v28 = vld [vmem:[#allocation57_spill] sm:$0xff] }
 0x129   :  { %v1021_v30 = vpop.f32.mrf.mxu1 }
 0x12a   :  { %2107 = vst [vmem:[#allocation8 + $0x40] sm:$0xff] %v1020_v14  ;;  %v1022_v31 = vadd.f32 %v1021_v30, %v764_v29  ;;  %v768_v44 = vpop.f32.mrf.mxu0  ;;  %1377 = vmatmul.mubr.f32.gmra.mxu0 %v3015_v46  ;;  %v3039_v46 = vld [vmem:[#allocation58_spill] sm:$0xff] }
 0x12b   :  { %v1025_v45 = vpop.f32.mrf.mxu1  ;;  %1634 = vmatmul.mubr.f32.gmra.mxu1 %v3016_v47  ;;  %1382 = vmatprep.mubr.f32.mxu0 %v3017_v61  ;;  %v3040_v47 = vld [vmem:[#allocation59_spill] sm:$0xff]  ;;  %v3041_v61 = vld [vmem:[#allocation60_spill] sm:$0xff] }
 0x12c   :  { %2108 = vst [vmem:[#allocation8 + $0x48] sm:$0xff] %v1022_v31  ;;  %v1026_v60 = vadd.f32 %v1025_v45, %v768_v44  ;;  %1639 = vmatprep.mubr.f32.mxu1 %v3018_v62  ;;  %v770_v63 = vpop.f32.mrf.mxu0  ;;  %v3042_v62 = vld [vmem:[#allocation61_spill] sm:$0xff] }
 0x12d   :  { %v1027_v20 = vpop.f32.mrf.mxu1 }
 0x12e   :  { %2111 = vst [vmem:[#allocation8 + $0x60] sm:$0xff] %v1026_v60  ;;  %v1028_v21 = vadd.f32 %v1027_v20, %v770_v63  ;;  %v774_v22 = vpop.f32.mrf.mxu0  ;;  %1383 = vmatmul.mubr.f32.gmra.mxu0 %v3019_v36  ;;  %v3043_v36 = vld [vmem:[#allocation62_spill] sm:$0xff] }
 0x12f   :  { %v1031_v23 = vpop.f32.mrf.mxu1  ;;  %1640 = vmatmul.mubr.f32.gmra.mxu1 %v3020_v37  ;;  %1388 = vmatprep.mubr.f32.mxu0 %v3021_v39  ;;  %v3044_v37 = vld [vmem:[#allocation63_spill] sm:$0xff]  ;;  %v3045_v39 = vld [vmem:[#allocation64_spill] sm:$0xff] }
 0x130   :  { %2112 = vst [vmem:[#allocation8 + $0x68] sm:$0xff] %v1028_v21  ;;  %v1032_v38 = vadd.f32 %v1031_v23, %v774_v22  ;;  %1645 = vmatprep.mubr.f32.mxu1 %v3022_v52  ;;  %v776_v53 = vpop.f32.mrf.mxu0  ;;  %v3046_v52 = vld [vmem:[#allocation65_spill] sm:$0xff] }
 0x131   :  { %v1033_v54 = vpop.f32.mrf.mxu1 }
 0x132   :  { %2115 = vst [vmem:[#allocation8 + $0x80] sm:$0xff] %v1032_v38  ;;  %v1034_v55 = vadd.f32 %v1033_v54, %v776_v53  ;;  %v780_v8 = vpop.f32.mrf.mxu0  ;;  %1389 = vmatmul.mubr.f32.gmra.mxu0 %v3023_v10  ;;  %v3047_v10 = vld [vmem:[#allocation66_spill] sm:$0xff] }
 0x133   :  { %v1037_v9 = vpop.f32.mrf.mxu1  ;;  %1646 = vmatmul.mubr.f32.gmra.mxu1 %v3024_v11  ;;  %1394 = vmatprep.mubr.f32.mxu0 %v3025_v17  ;;  %v3048_v11 = vld [vmem:[#allocation67_spill] sm:$0xff]  ;;  %v3049_v17 = vld [vmem:[#allocation68_spill] sm:$0xff] }
 0x134   :  { %2116 = vst [vmem:[#allocation8 + $0x88] sm:$0xff] %v1034_v55  ;;  %v1038_v16 = vadd.f32 %v1037_v9, %v780_v8  ;;  %1651 = vmatprep.mubr.f32.mxu1 %v3026_v18  ;;  %v782_v19 = vpop.f32.mrf.mxu0  ;;  %v3050_v18 = vld [vmem:[#allocation69_spill] sm:$0xff] }
 0x135   :  { %v1039_v24 = vpop.f32.mrf.mxu1 }
 0x136   :  { %2119 = vst [vmem:[#allocation8 + $0xa0] sm:$0xff] %v1038_v16  ;;  %v1040_v25 = vadd.f32 %v1039_v24, %v782_v19  ;;  %v786_v26 = vpop.f32.mrf.mxu0  ;;  %1395 = vmatmul.mubr.f32.gmra.mxu0 %v3027_v32  ;;  %v3051_v32 = vld [vmem:[#allocation70_spill] sm:$0xff] }
 0x137   :  { %v1043_v27 = vpop.f32.mrf.mxu1  ;;  %1652 = vmatmul.mubr.f32.gmra.mxu1 %v3028_v33  ;;  %1400 = vmatprep.mubr.f32.mxu0 %v3029_v35  ;;  %v3052_v33 = vld [vmem:[#allocation71_spill] sm:$0xff]  ;;  %v3053_v35 = vld [vmem:[#allocation72_spill] sm:$0xff] }
 0x138   :  { %2120 = vst [vmem:[#allocation8 + $0xa8] sm:$0xff] %v1040_v25  ;;  %v1044_v34 = vadd.f32 %v1043_v27, %v786_v26  ;;  %1657 = vmatprep.mubr.f32.mxu1 %v3030_v40  ;;  %v788_v41 = vpop.f32.mrf.mxu0  ;;  %v3054_v40 = vld [vmem:[#allocation73_spill] sm:$0xff] }
 0x139   :  { %v1045_v42 = vpop.f32.mrf.mxu1 }
 0x13a   :  { %2123 = vst [vmem:[#allocation8 + $0xc0] sm:$0xff] %v1044_v34  ;;  %v1046_v43 = vadd.f32 %v1045_v42, %v788_v41  ;;  %v792_v48 = vpop.f32.mrf.mxu0  ;;  %1401 = vmatmul.mubr.f32.gmra.mxu0 %v3031_v50  ;;  %v3055_v50 = vld [vmem:[#allocation74_spill] sm:$0xff] }
 0x13b   :  { %v1049_v49 = vpop.f32.mrf.mxu1  ;;  %1658 = vmatmul.mubr.f32.gmra.mxu1 %v3032_v51  ;;  %1406 = vmatprep.mubr.f32.mxu0 %v3033_v57  ;;  %v3056_v51 = vld [vmem:[#allocation75_spill] sm:$0xff]  ;;  %v3057_v57 = vld [vmem:[#allocation76_spill] sm:$0xff] }
 0x13c   :  { %2124 = vst [vmem:[#allocation8 + $0xc8] sm:$0xff] %v1046_v43  ;;  %v1050_v56 = vadd.f32 %v1049_v49, %v792_v48  ;;  %1663 = vmatprep.mubr.f32.mxu1 %v3034_v58  ;;  %v794_v59 = vpop.f32.mrf.mxu0  ;;  %v3058_v58 = vld [vmem:[#allocation77_spill] sm:$0xff] }
 0x13d   :  { %v1051_v0 = vpop.f32.mrf.mxu1 }
 0x13e   :  { %2127 = vst [vmem:[#allocation8 + $0xe0] sm:$0xff] %v1050_v56  ;;  %v1052_v1 = vadd.f32 %v1051_v0, %v794_v59  ;;  %v798_v2 = vpop.f32.mrf.mxu0  ;;  %1407 = vmatmul.mubr.f32.gmra.mxu0 %v3035_v12  ;;  %v3059_v12 = vld [vmem:[#allocation78_spill] sm:$0xff] }
 0x13f   :  { %v1055_v3 = vpop.f32.mrf.mxu1  ;;  %1664 = vmatmul.mubr.f32.gmra.mxu1 %v3036_v13  ;;  %1412 = vmatprep.mubr.f32.mxu0 %v3037_v15  ;;  %v3060_v13 = vld [vmem:[#allocation79_spill] sm:$0xff] }
 0x140   :  { %2128 = vst [vmem:[#allocation8 + $0xe8] sm:$0xff] %v1052_v1  ;;  %v1056_v14 = vadd.f32 %v1055_v3, %v798_v2  ;;  %1669 = vmatprep.mubr.f32.mxu1 %v3038_v28  ;;  %v800_v29 = vpop.f32.mrf.mxu0 }
 0x141   :  { %v1057_v30 = vpop.f32.mrf.mxu1 }
 0x142   :  { %2131 = vst [vmem:[#allocation8 + $0x100] sm:$0xff] %v1056_v14  ;;  %v1058_v31 = vadd.f32 %v1057_v30, %v800_v29  ;;  %v804_v44 = vpop.f32.mrf.mxu0  ;;  %1413 = vmatmul.mubr.f32.gmra.mxu0 %v3039_v46 }
 0x143   :  { %v1061_v45 = vpop.f32.mrf.mxu1  ;;  %1670 = vmatmul.mubr.f32.gmra.mxu1 %v3040_v47  ;;  %1418 = vmatprep.mubr.f32.mxu0 %v3041_v61 }
 0x144   :  { %2132 = vst [vmem:[#allocation8 + $0x108] sm:$0xff] %v1058_v31  ;;  %v1062_v60 = vadd.f32 %v1061_v45, %v804_v44  ;;  %1675 = vmatprep.mubr.f32.mxu1 %v3042_v62  ;;  %v806_v63 = vpop.f32.mrf.mxu0 }
 0x145   :  { %v1063_v20 = vpop.f32.mrf.mxu1 }
 0x146   :  { %2135 = vst [vmem:[#allocation8 + $0x120] sm:$0xff] %v1062_v60  ;;  %v1064_v21 = vadd.f32 %v1063_v20, %v806_v63  ;;  %v810_v22 = vpop.f32.mrf.mxu0  ;;  %1419 = vmatmul.mubr.f32.gmra.mxu0 %v3043_v36 }
 0x147   :  { %v1067_v23 = vpop.f32.mrf.mxu1  ;;  %1676 = vmatmul.mubr.f32.gmra.mxu1 %v3044_v37  ;;  %1424 = vmatprep.mubr.f32.mxu0 %v3045_v39 }
 0x148   :  { %2136 = vst [vmem:[#allocation8 + $0x128] sm:$0xff] %v1064_v21  ;;  %v1068_v38 = vadd.f32 %v1067_v23, %v810_v22  ;;  %1681 = vmatprep.mubr.f32.mxu1 %v3046_v52  ;;  %v812_v53 = vpop.f32.mrf.mxu0 }
 0x149   :  { %v1069_v54 = vpop.f32.mrf.mxu1 }
 0x14a   :  { %2139 = vst [vmem:[#allocation8 + $0x140] sm:$0xff] %v1068_v38  ;;  %v1070_v55 = vadd.f32 %v1069_v54, %v812_v53  ;;  %v816_v8 = vpop.f32.mrf.mxu0  ;;  %1425 = vmatmul.mubr.f32.gmra.mxu0 %v3047_v10 }
 0x14b   :  { %v1073_v9 = vpop.f32.mrf.mxu1  ;;  %1682 = vmatmul.mubr.f32.gmra.mxu1 %v3048_v11  ;;  %1430 = vmatprep.mubr.f32.mxu0 %v3049_v17 }
 0x14c   :  { %2140 = vst [vmem:[#allocation8 + $0x148] sm:$0xff] %v1070_v55  ;;  %v1074_v16 = vadd.f32 %v1073_v9, %v816_v8  ;;  %1687 = vmatprep.mubr.f32.mxu1 %v3050_v18  ;;  %v818_v19 = vpop.f32.mrf.mxu0 }
 0x14d   :  { %v1075_v24 = vpop.f32.mrf.mxu1 }
 0x14e   :  { %2143 = vst [vmem:[#allocation8 + $0x160] sm:$0xff] %v1074_v16  ;;  %v1076_v25 = vadd.f32 %v1075_v24, %v818_v19  ;;  %v822_v26 = vpop.f32.mrf.mxu0  ;;  %1431 = vmatmul.mubr.f32.gmra.mxu0 %v3051_v32 }
 0x14f   :  { %v1079_v27 = vpop.f32.mrf.mxu1  ;;  %1688 = vmatmul.mubr.f32.gmra.mxu1 %v3052_v33  ;;  %1436 = vmatprep.mubr.f32.mxu0 %v3053_v35 }
 0x150   :  { %2144 = vst [vmem:[#allocation8 + $0x168] sm:$0xff] %v1076_v25  ;;  %v1080_v34 = vadd.f32 %v1079_v27, %v822_v26  ;;  %1693 = vmatprep.mubr.f32.mxu1 %v3054_v40  ;;  %v824_v41 = vpop.f32.mrf.mxu0 }
 0x151   :  { %v1081_v42 = vpop.f32.mrf.mxu1 }
 0x152   :  { %2147 = vst [vmem:[#allocation8 + $0x180] sm:$0xff] %v1080_v34  ;;  %v1082_v43 = vadd.f32 %v1081_v42, %v824_v41  ;;  %v828_v48 = vpop.f32.mrf.mxu0  ;;  %1437 = vmatmul.mubr.f32.gmra.mxu0 %v3055_v50 }
 0x153   :  { %v1085_v49 = vpop.f32.mrf.mxu1  ;;  %1694 = vmatmul.mubr.f32.gmra.mxu1 %v3056_v51  ;;  %1442 = vmatprep.mubr.f32.mxu0 %v3057_v57 }
 0x154   :  { %2148 = vst [vmem:[#allocation8 + $0x188] sm:$0xff] %v1082_v43  ;;  %v1086_v56 = vadd.f32 %v1085_v49, %v828_v48  ;;  %1699 = vmatprep.mubr.f32.mxu1 %v3058_v58  ;;  %v830_v59 = vpop.f32.mrf.mxu0 }
 0x155   :  { %v1087_v0 = vpop.f32.mrf.mxu1 }
 0x156   :  { %2151 = vst [vmem:[#allocation8 + $0x1a0] sm:$0xff] %v1086_v56  ;;  %v1088_v1 = vadd.f32 %v1087_v0, %v830_v59  ;;  %v834_v2 = vpop.f32.mrf.mxu0  ;;  %1443 = vmatmul.mubr.f32.gmra.mxu0 %v3059_v12 }
 0x157   :  { %v1091_v3 = vpop.f32.mrf.mxu1  ;;  %1700 = vmatmul.mubr.f32.gmra.mxu1 %v3060_v13  ;;  %1448 = vmatprep.mubr.f32.mxu0 %v2712_v4 }
 0x158   :  { %2152 = vst [vmem:[#allocation8 + $0x1a8] sm:$0xff] %v1088_v1  ;;  %v1092_v14 = vadd.f32 %v1091_v3, %v834_v2  ;;  %1705 = vmatprep.mubr.f32.mxu1 %v2714_v5  ;;  %v836_v15 = vpop.f32.mrf.mxu0 }
 0x159   :  { %v1093_v28 = vpop.f32.mrf.mxu1 }
 0x15a   :  { %2155 = vst [vmem:[#allocation8 + $0x1c0] sm:$0xff] %v1092_v14  ;;  %v1094_v29 = vadd.f32 %v1093_v28, %v836_v15  ;;  %v840_v30 = vpop.f32.mrf.mxu0  ;;  %1449 = vmatmul.mubr.f32.gmra.mxu0 %v2716_v6 }
 0x15b   :  { %v1097_v31 = vpop.f32.mrf.mxu1  ;;  %1706 = vmatmul.mubr.f32.gmra.mxu1 %v2718_v7 }
 0x15c   :  { %2156 = vst [vmem:[#allocation8 + $0x1c8] sm:$0xff] %v1094_v29  ;;  %v1098_v44 = vadd.f32 %v1097_v31, %v840_v30  ;;  %v842_v45 = vpop.f32.mrf.mxu0 }
 0x15d   :  { %v1099_v46 = vpop.f32.mrf.mxu1 }
 0x15e   :  { %2159 = vst [vmem:[#allocation8 + $0x1e0] sm:$0xff] %v1098_v44  ;;  %v1100_v47 = vadd.f32 %v1099_v46, %v842_v45  ;;  %v846_v60 = vpop.f32.mrf.mxu0 }
 0x15f   :  { %v1103_v4 = vpop.f32.mrf.mxu1 }
 0x160   :  { %2160 = vst [vmem:[#allocation8 + $0x1e8] sm:$0xff] %v1100_v47  ;;  %v1104_v5 = vadd.f32 %v1103_v4, %v846_v60  ;;  %v848_v61 = vpop.f32.mrf.mxu0 }
 0x161   :  { %v1105_v62 = vpop.f32.mrf.mxu1 }
 0x162   :  { %2163 = vst [vmem:[#allocation8 + $0x200] sm:$0xff] %v1104_v5  ;;  %v1106_v63 = vadd.f32 %v1105_v62, %v848_v61  ;;  %v852_v20 = vpop.f32.mrf.mxu0 }
 0x163   :  { %v1109_v21 = vpop.f32.mrf.mxu1 }
 0x164   :  { %2164 = vst [vmem:[#allocation8 + $0x208] sm:$0xff] %v1106_v63  ;;  %v1110_v6 = vadd.f32 %v1109_v21, %v852_v20  ;;  %v854_v22 = vpop.f32.mrf.mxu0 }
 0x165   :  { %v1111_v7 = vpop.f32.mrf.mxu1 }
 0x166   :  { %2167 = vst [vmem:[#allocation8 + $0x220] sm:$0xff] %v1110_v6  ;;  %v1112_v23 = vadd.f32 %v1111_v7, %v854_v22  ;;  %v858_v36 = vpop.f32.mrf.mxu0 }
 0x167   :  { %v1115_v37 = vpop.f32.mrf.mxu1 }
 0x168   :  { %2168 = vst [vmem:[#allocation8 + $0x228] sm:$0xff] %v1112_v23  ;;  %v1116_v38 = vadd.f32 %v1115_v37, %v858_v36  ;;  %v860_v39 = vpop.f32.mrf.mxu0 }
 0x169   :  { %v1117_v52 = vpop.f32.mrf.mxu1 }
 0x16a   :  { %2171 = vst [vmem:[#allocation8 + $0x240] sm:$0xff] %v1116_v38  ;;  %v1118_v53 = vadd.f32 %v1117_v52, %v860_v39  ;;  %v864_v54 = vpop.f32.mrf.mxu0 }
 0x16b   :  { %v1121_v55 = vpop.f32.mrf.mxu1 }
 0x16c   :  { %2172 = vst [vmem:[#allocation8 + $0x248] sm:$0xff] %v1118_v53  ;;  %v1122_v8 = vadd.f32 %v1121_v55, %v864_v54  ;;  %v866_v9 = vpop.f32.mrf.mxu0 }
 0x16d   :  { %v1123_v10 = vpop.f32.mrf.mxu1 }
 0x16e   :  { %2175 = vst [vmem:[#allocation8 + $0x260] sm:$0xff] %v1122_v8  ;;  %v1124_v11 = vadd.f32 %v1123_v10, %v866_v9  ;;  %v870_v16 = vpop.f32.mrf.mxu0 }
 0x16f   :  { %v1127_v17 = vpop.f32.mrf.mxu1 }
 0x170   :  { %2176 = vst [vmem:[#allocation8 + $0x268] sm:$0xff] %v1124_v11  ;;  %v1128_v18 = vadd.f32 %v1127_v17, %v870_v16  ;;  %v872_v19 = vpop.f32.mrf.mxu0 }
 0x171   :  { %v1129_v24 = vpop.f32.mrf.mxu1 }
 0x172   :  { %2179 = vst [vmem:[#allocation8 + $0x280] sm:$0xff] %v1128_v18  ;;  %v1130_v25 = vadd.f32 %v1129_v24, %v872_v19  ;;  %v876_v26 = vpop.f32.mrf.mxu0 }
 0x173   :  { %v1133_v27 = vpop.f32.mrf.mxu1 }
 0x174   :  { %2180 = vst [vmem:[#allocation8 + $0x288] sm:$0xff] %v1130_v25  ;;  %v1134_v32 = vadd.f32 %v1133_v27, %v876_v26  ;;  %v878_v33 = vpop.f32.mrf.mxu0 }
 0x175   :  { %v1135_v34 = vpop.f32.mrf.mxu1 }
 0x176   :  { %2183 = vst [vmem:[#allocation8 + $0x2a0] sm:$0xff] %v1134_v32  ;;  %v1136_v35 = vadd.f32 %v1135_v34, %v878_v33  ;;  %v882_v40 = vpop.f32.mrf.mxu0 }
 0x177   :  { %v1139_v41 = vpop.f32.mrf.mxu1 }
 0x178   :  { %2184 = vst [vmem:[#allocation8 + $0x2a8] sm:$0xff] %v1136_v35  ;;  %v1140_v42 = vadd.f32 %v1139_v41, %v882_v40  ;;  %v884_v43 = vpop.f32.mrf.mxu0 }
 0x179   :  { %v1141_v48 = vpop.f32.mrf.mxu1 }
 0x17a   :  { %2187 = vst [vmem:[#allocation8 + $0x2c0] sm:$0xff] %v1140_v42  ;;  %v1142_v49 = vadd.f32 %v1141_v48, %v884_v43  ;;  %v888_v50 = vpop.f32.mrf.mxu0 }
 0x17b   :  { %v1145_v51 = vpop.f32.mrf.mxu1 }
 0x17c   :  { %2188 = vst [vmem:[#allocation8 + $0x2c8] sm:$0xff] %v1142_v49  ;;  %v1146_v56 = vadd.f32 %v1145_v51, %v888_v50  ;;  %v890_v57 = vpop.f32.mrf.mxu0 }
 0x17d   :  { %v1147_v58 = vpop.f32.mrf.mxu1 }
 0x17e   :  { %2191 = vst [vmem:[#allocation8 + $0x2e0] sm:$0xff] %v1146_v56  ;;  %v1148_v59 = vadd.f32 %v1147_v58, %v890_v57  ;;  %v894_v0 = vpop.f32.mrf.mxu0 }
 0x17f   :  { %v1151_v1 = vpop.f32.mrf.mxu1 }
 0x180   :  { %2192 = vst [vmem:[#allocation8 + $0x2e8] sm:$0xff] %v1148_v59  ;;  %v1152_v2 = vadd.f32 %v1151_v1, %v894_v0  ;;  %v896_v3 = vpop.f32.mrf.mxu0 }
 0x181   :  { %v1153_v12 = vpop.f32.mrf.mxu1 }
 0x182   :  { %2195 = vst [vmem:[#allocation8 + $0x300] sm:$0xff] %v1152_v2  ;;  %v1154_v13 = vadd.f32 %v1153_v12, %v896_v3  ;;  %v900_v14 = vpop.f32.mrf.mxu0 }
 0x183   :  { %v1157_v15 = vpop.f32.mrf.mxu1 }
 0x184   :  { %2196 = vst [vmem:[#allocation8 + $0x308] sm:$0xff] %v1154_v13  ;;  %v1158_v28 = vadd.f32 %v1157_v15, %v900_v14  ;;  %v902_v29 = vpop.f32.mrf.mxu0 }
 0x185   :  { %v1159_v30 = vpop.f32.mrf.mxu1 }
 0x186   :  { %2199 = vst [vmem:[#allocation8 + $0x320] sm:$0xff] %v1158_v28  ;;  %v1160_v31 = vadd.f32 %v1159_v30, %v902_v29  ;;  %v906_v44 = vpop.f32.mrf.mxu0 }
 0x187   :  { %v1163_v45 = vpop.f32.mrf.mxu1 }
 0x188   :  { %2200 = vst [vmem:[#allocation8 + $0x328] sm:$0xff] %v1160_v31  ;;  %v1164_v46 = vadd.f32 %v1163_v45, %v906_v44  ;;  %v908_v47 = vpop.f32.mrf.mxu0 }
 0x189   :  { %v1165_v60 = vpop.f32.mrf.mxu1 }
 0x18a   :  { %2203 = vst [vmem:[#allocation8 + $0x340] sm:$0xff] %v1164_v46  ;;  %v1166_v4 = vadd.f32 %v1165_v60, %v908_v47  ;;  %v912_v5 = vpop.f32.mrf.mxu0 }
 0x18b   :  { %v1169_v61 = vpop.f32.mrf.mxu1 }
 0x18c   :  { %2204 = vst [vmem:[#allocation8 + $0x348] sm:$0xff] %v1166_v4  ;;  %v1170_v62 = vadd.f32 %v1169_v61, %v912_v5  ;;  %v914_v63 = vpop.f32.mrf.mxu0 }
 0x18d   :  { %v1171_v20 = vpop.f32.mrf.mxu1 }
 0x18e   :  { %2207 = vst [vmem:[#allocation8 + $0x360] sm:$0xff] %v1170_v62  ;;  %v1172_v21 = vadd.f32 %v1171_v20, %v914_v63  ;;  %v918_v6 = vpop.f32.mrf.mxu0 }
 0x18f   :  { %v1175_v22 = vpop.f32.mrf.mxu1 }
 0x190   :  { %2208 = vst [vmem:[#allocation8 + $0x368] sm:$0xff] %v1172_v21  ;;  %v1176_v7 = vadd.f32 %v1175_v22, %v918_v6  ;;  %v920_v23 = vpop.f32.mrf.mxu0 }
 0x191   :  { %v1177_v36 = vpop.f32.mrf.mxu1 }
 0x192   :  { %2211 = vst [vmem:[#allocation8 + $0x380] sm:$0xff] %v1176_v7  ;;  %v1178_v37 = vadd.f32 %v1177_v36, %v920_v23  ;;  %v924_v38 = vpop.f32.mrf.mxu0 }
 0x193   :  { %v1181_v39 = vpop.f32.mrf.mxu1 }
 0x194   :  { %2212 = vst [vmem:[#allocation8 + $0x388] sm:$0xff] %v1178_v37  ;;  %v1182_v52 = vadd.f32 %v1181_v39, %v924_v38  ;;  %v926_v53 = vpop.f32.mrf.mxu0 }
 0x195   :  { %v1183_v54 = vpop.f32.mrf.mxu1 }
 0x196   :  { %2215 = vst [vmem:[#allocation8 + $0x3a0] sm:$0xff] %v1182_v52  ;;  %v1184_v55 = vadd.f32 %v1183_v54, %v926_v53  ;;  %v930_v8 = vpop.f32.mrf.mxu0 }
 0x197   :  { %v1187_v9 = vpop.f32.mrf.mxu1 }
 0x198   :  { %2216 = vst [vmem:[#allocation8 + $0x3a8] sm:$0xff] %v1184_v55  ;;  %v1188_v10 = vadd.f32 %v1187_v9, %v930_v8  ;;  %v932_v11 = vpop.f32.mrf.mxu0 }
 0x199   :  { %v1189_v16 = vpop.f32.mrf.mxu1 }
 0x19a   :  { %2219 = vst [vmem:[#allocation8 + $0x3c0] sm:$0xff] %v1188_v10  ;;  %v1190_v17 = vadd.f32 %v1189_v16, %v932_v11  ;;  %v936_v18 = vpop.f32.mrf.mxu0 }
 0x19b   :  { %v1193_v19 = vpop.f32.mrf.mxu1 }
 0x19c   :  { %2220 = vst [vmem:[#allocation8 + $0x3c8] sm:$0xff] %v1190_v17  ;;  %v1194_v24 = vadd.f32 %v1193_v19, %v936_v18  ;;  %v938_v25 = vpop.f32.mrf.mxu0 }
 0x19d   :  { %v1195_v26 = vpop.f32.mrf.mxu1 }
 0x19e   :  { %2223 = vst [vmem:[#allocation8 + $0x3e0] sm:$0xff] %v1194_v24  ;;  %v1196_v27 = vadd.f32 %v1195_v26, %v938_v25  ;;  %v1264_v32 = vpop.f32.mrf.mxu0 }
 0x19f   :  { %v1521_v33 = vpop.f32.mrf.mxu1 }
 0x1a0   :  { %2224 = vst [vmem:[#allocation8 + $0x3e8] sm:$0xff] %v1196_v27  ;;  %v1522_v34 = vadd.f32 %v1521_v33, %v1264_v32  ;;  %v1266_v35 = vpop.f32.mrf.mxu0 }
 0x1a1   :  { %v1523_v40 = vpop.f32.mrf.mxu1 }
 0x1a2   :  { %2101 = vst [vmem:[#allocation8 + $0x10] sm:$0xff] %v1522_v34  ;;  %v1524_v41 = vadd.f32 %v1523_v40, %v1266_v35  ;;  %v1270_v42 = vpop.f32.mrf.mxu0 }
 0x1a3   :  { %v1527_v43 = vpop.f32.mrf.mxu1 }
 0x1a4   :  { %2102 = vst [vmem:[#allocation8 + $0x18] sm:$0xff] %v1524_v41  ;;  %v1528_v48 = vadd.f32 %v1527_v43, %v1270_v42  ;;  %v1272_v49 = vpop.f32.mrf.mxu0 }
 0x1a5   :  { %v1529_v50 = vpop.f32.mrf.mxu1 }
 0x1a6   :  { %2105 = vst [vmem:[#allocation8 + $0x30] sm:$0xff] %v1528_v48  ;;  %v1530_v51 = vadd.f32 %v1529_v50, %v1272_v49  ;;  %v1276_v56 = vpop.f32.mrf.mxu0 }
 0x1a7   :  { %v1533_v57 = vpop.f32.mrf.mxu1 }
 0x1a8   :  { %2106 = vst [vmem:[#allocation8 + $0x38] sm:$0xff] %v1530_v51  ;;  %v1534_v58 = vadd.f32 %v1533_v57, %v1276_v56  ;;  %v1278_v59 = vpop.f32.mrf.mxu0 }
 0x1a9   :  { %v1535_v0 = vpop.f32.mrf.mxu1 }
 0x1aa   :  { %2109 = vst [vmem:[#allocation8 + $0x50] sm:$0xff] %v1534_v58  ;;  %v1536_v1 = vadd.f32 %v1535_v0, %v1278_v59  ;;  %v1282_v2 = vpop.f32.mrf.mxu0 }
 0x1ab   :  { %v1539_v3 = vpop.f32.mrf.mxu1 }
 0x1ac   :  { %2110 = vst [vmem:[#allocation8 + $0x58] sm:$0xff] %v1536_v1  ;;  %v1540_v12 = vadd.f32 %v1539_v3, %v1282_v2  ;;  %v1284_v13 = vpop.f32.mrf.mxu0 }
 0x1ad   :  { %v1541_v14 = vpop.f32.mrf.mxu1 }
 0x1ae   :  { %2113 = vst [vmem:[#allocation8 + $0x70] sm:$0xff] %v1540_v12  ;;  %v1542_v15 = vadd.f32 %v1541_v14, %v1284_v13  ;;  %v1288_v28 = vpop.f32.mrf.mxu0 }
 0x1af   :  { %v1545_v29 = vpop.f32.mrf.mxu1 }
 0x1b0   :  { %2114 = vst [vmem:[#allocation8 + $0x78] sm:$0xff] %v1542_v15  ;;  %v1546_v30 = vadd.f32 %v1545_v29, %v1288_v28  ;;  %v1290_v31 = vpop.f32.mrf.mxu0 }
 0x1b1   :  { %v1547_v44 = vpop.f32.mrf.mxu1 }
 0x1b2   :  { %2117 = vst [vmem:[#allocation8 + $0x90] sm:$0xff] %v1546_v30  ;;  %v1548_v45 = vadd.f32 %v1547_v44, %v1290_v31  ;;  %v1294_v46 = vpop.f32.mrf.mxu0 }
 0x1b3   :  { %v1551_v47 = vpop.f32.mrf.mxu1 }
 0x1b4   :  { %2118 = vst [vmem:[#allocation8 + $0x98] sm:$0xff] %v1548_v45  ;;  %v1552_v60 = vadd.f32 %v1551_v47, %v1294_v46  ;;  %v1296_v4 = vpop.f32.mrf.mxu0 }
 0x1b5   :  { %v1553_v5 = vpop.f32.mrf.mxu1 }
 0x1b6   :  { %2121 = vst [vmem:[#allocation8 + $0xb0] sm:$0xff] %v1552_v60  ;;  %v1554_v61 = vadd.f32 %v1553_v5, %v1296_v4  ;;  %v1300_v62 = vpop.f32.mrf.mxu0 }
 0x1b7   :  { %v1557_v63 = vpop.f32.mrf.mxu1 }
 0x1b8   :  { %2122 = vst [vmem:[#allocation8 + $0xb8] sm:$0xff] %v1554_v61  ;;  %v1558_v20 = vadd.f32 %v1557_v63, %v1300_v62  ;;  %v1302_v21 = vpop.f32.mrf.mxu0 }
 0x1b9   :  { %v1559_v6 = vpop.f32.mrf.mxu1 }
 0x1ba   :  { %2125 = vst [vmem:[#allocation8 + $0xd0] sm:$0xff] %v1558_v20  ;;  %v1560_v22 = vadd.f32 %v1559_v6, %v1302_v21  ;;  %v1306_v7 = vpop.f32.mrf.mxu0 }
 0x1bb   :  { %v1563_v23 = vpop.f32.mrf.mxu1 }
 0x1bc   :  { %2126 = vst [vmem:[#allocation8 + $0xd8] sm:$0xff] %v1560_v22  ;;  %v1564_v36 = vadd.f32 %v1563_v23, %v1306_v7  ;;  %v1308_v37 = vpop.f32.mrf.mxu0 }
 0x1bd   :  { %v1565_v38 = vpop.f32.mrf.mxu1 }
 0x1be   :  { %2129 = vst [vmem:[#allocation8 + $0xf0] sm:$0xff] %v1564_v36  ;;  %v1566_v39 = vadd.f32 %v1565_v38, %v1308_v37  ;;  %v1312_v52 = vpop.f32.mrf.mxu0 }
 0x1bf   :  { %v1569_v53 = vpop.f32.mrf.mxu1 }
 0x1c0   :  { %2130 = vst [vmem:[#allocation8 + $0xf8] sm:$0xff] %v1566_v39  ;;  %v1570_v54 = vadd.f32 %v1569_v53, %v1312_v52  ;;  %v1314_v55 = vpop.f32.mrf.mxu0 }
 0x1c1   :  { %v1571_v8 = vpop.f32.mrf.mxu1 }
 0x1c2   :  { %2133 = vst [vmem:[#allocation8 + $0x110] sm:$0xff] %v1570_v54  ;;  %v1572_v9 = vadd.f32 %v1571_v8, %v1314_v55  ;;  %v1318_v10 = vpop.f32.mrf.mxu0 }
 0x1c3   :  { %v1575_v11 = vpop.f32.mrf.mxu1 }
 0x1c4   :  { %2134 = vst [vmem:[#allocation8 + $0x118] sm:$0xff] %v1572_v9  ;;  %v1576_v16 = vadd.f32 %v1575_v11, %v1318_v10  ;;  %v1320_v17 = vpop.f32.mrf.mxu0 }
 0x1c5   :  { %v1577_v18 = vpop.f32.mrf.mxu1 }
 0x1c6   :  { %2137 = vst [vmem:[#allocation8 + $0x130] sm:$0xff] %v1576_v16  ;;  %v1578_v19 = vadd.f32 %v1577_v18, %v1320_v17  ;;  %v1324_v24 = vpop.f32.mrf.mxu0 }
 0x1c7   :  { %v1581_v25 = vpop.f32.mrf.mxu1 }
 0x1c8   :  { %2138 = vst [vmem:[#allocation8 + $0x138] sm:$0xff] %v1578_v19  ;;  %v1582_v26 = vadd.f32 %v1581_v25, %v1324_v24  ;;  %v1326_v27 = vpop.f32.mrf.mxu0 }
 0x1c9   :  { %v1583_v32 = vpop.f32.mrf.mxu1 }
 0x1ca   :  { %2141 = vst [vmem:[#allocation8 + $0x150] sm:$0xff] %v1582_v26  ;;  %v1584_v33 = vadd.f32 %v1583_v32, %v1326_v27  ;;  %v1330_v34 = vpop.f32.mrf.mxu0 }
 0x1cb   :  { %v1587_v35 = vpop.f32.mrf.mxu1 }
 0x1cc   :  { %2142 = vst [vmem:[#allocation8 + $0x158] sm:$0xff] %v1584_v33  ;;  %v1588_v40 = vadd.f32 %v1587_v35, %v1330_v34  ;;  %v1332_v41 = vpop.f32.mrf.mxu0 }
 0x1cd   :  { %v1589_v42 = vpop.f32.mrf.mxu1 }
 0x1ce   :  { %2145 = vst [vmem:[#allocation8 + $0x170] sm:$0xff] %v1588_v40  ;;  %v1590_v43 = vadd.f32 %v1589_v42, %v1332_v41  ;;  %v1336_v48 = vpop.f32.mrf.mxu0 }
 0x1cf   :  { %v1593_v49 = vpop.f32.mrf.mxu1 }
 0x1d0   :  { %2146 = vst [vmem:[#allocation8 + $0x178] sm:$0xff] %v1590_v43  ;;  %v1594_v50 = vadd.f32 %v1593_v49, %v1336_v48  ;;  %v1338_v51 = vpop.f32.mrf.mxu0 }
 0x1d1   :  { %v1595_v56 = vpop.f32.mrf.mxu1 }
 0x1d2   :  { %2149 = vst [vmem:[#allocation8 + $0x190] sm:$0xff] %v1594_v50  ;;  %v1596_v57 = vadd.f32 %v1595_v56, %v1338_v51  ;;  %v1342_v58 = vpop.f32.mrf.mxu0 }
 0x1d3   :  { %v1599_v59 = vpop.f32.mrf.mxu1 }
 0x1d4   :  { %2150 = vst [vmem:[#allocation8 + $0x198] sm:$0xff] %v1596_v57  ;;  %v1600_v0 = vadd.f32 %v1599_v59, %v1342_v58  ;;  %v1344_v1 = vpop.f32.mrf.mxu0 }
 0x1d5   :  { %v1601_v2 = vpop.f32.mrf.mxu1 }
 0x1d6   :  { %2153 = vst [vmem:[#allocation8 + $0x1b0] sm:$0xff] %v1600_v0  ;;  %v1602_v3 = vadd.f32 %v1601_v2, %v1344_v1  ;;  %v1348_v12 = vpop.f32.mrf.mxu0 }
 0x1d7   :  { %v1605_v13 = vpop.f32.mrf.mxu1 }
 0x1d8   :  { %2154 = vst [vmem:[#allocation8 + $0x1b8] sm:$0xff] %v1602_v3  ;;  %v1606_v14 = vadd.f32 %v1605_v13, %v1348_v12  ;;  %v1350_v15 = vpop.f32.mrf.mxu0 }
 0x1d9   :  { %v1607_v28 = vpop.f32.mrf.mxu1 }
 0x1da   :  { %2157 = vst [vmem:[#allocation8 + $0x1d0] sm:$0xff] %v1606_v14  ;;  %v1608_v29 = vadd.f32 %v1607_v28, %v1350_v15  ;;  %v1354_v30 = vpop.f32.mrf.mxu0 }
 0x1db   :  { %v1611_v31 = vpop.f32.mrf.mxu1 }
 0x1dc   :  { %2158 = vst [vmem:[#allocation8 + $0x1d8] sm:$0xff] %v1608_v29  ;;  %v1612_v44 = vadd.f32 %v1611_v31, %v1354_v30  ;;  %v1356_v45 = vpop.f32.mrf.mxu0 }
 0x1dd   :  { %v1613_v46 = vpop.f32.mrf.mxu1 }
 0x1de   :  { %2161 = vst [vmem:[#allocation8 + $0x1f0] sm:$0xff] %v1612_v44  ;;  %v1614_v47 = vadd.f32 %v1613_v46, %v1356_v45  ;;  %v1360_v60 = vpop.f32.mrf.mxu0 }
 0x1df   :  { %v1617_v4 = vpop.f32.mrf.mxu1 }
 0x1e0   :  { %2162 = vst [vmem:[#allocation8 + $0x1f8] sm:$0xff] %v1614_v47  ;;  %v1618_v5 = vadd.f32 %v1617_v4, %v1360_v60  ;;  %v1362_v61 = vpop.f32.mrf.mxu0 }
 0x1e1   :  { %v1619_v62 = vpop.f32.mrf.mxu1 }
 0x1e2   :  { %2165 = vst [vmem:[#allocation8 + $0x210] sm:$0xff] %v1618_v5  ;;  %v1620_v63 = vadd.f32 %v1619_v62, %v1362_v61  ;;  %v1366_v20 = vpop.f32.mrf.mxu0 }
 0x1e3   :  { %v1623_v21 = vpop.f32.mrf.mxu1 }
 0x1e4   :  { %2166 = vst [vmem:[#allocation8 + $0x218] sm:$0xff] %v1620_v63  ;;  %v1624_v6 = vadd.f32 %v1623_v21, %v1366_v20  ;;  %v1368_v22 = vpop.f32.mrf.mxu0 }
 0x1e5   :  { %v1625_v7 = vpop.f32.mrf.mxu1 }
 0x1e6   :  { %2169 = vst [vmem:[#allocation8 + $0x230] sm:$0xff] %v1624_v6  ;;  %v1626_v23 = vadd.f32 %v1625_v7, %v1368_v22  ;;  %v1372_v36 = vpop.f32.mrf.mxu0 }
 0x1e7   :  { %v1629_v37 = vpop.f32.mrf.mxu1 }
 0x1e8   :  { %2170 = vst [vmem:[#allocation8 + $0x238] sm:$0xff] %v1626_v23  ;;  %v1630_v38 = vadd.f32 %v1629_v37, %v1372_v36  ;;  %v1374_v39 = vpop.f32.mrf.mxu0 }
 0x1e9   :  { %v1631_v52 = vpop.f32.mrf.mxu1 }
 0x1ea   :  { %2173 = vst [vmem:[#allocation8 + $0x250] sm:$0xff] %v1630_v38  ;;  %v1632_v53 = vadd.f32 %v1631_v52, %v1374_v39  ;;  %v1378_v54 = vpop.f32.mrf.mxu0 }
 0x1eb   :  { %v1635_v55 = vpop.f32.mrf.mxu1 }
 0x1ec   :  { %2174 = vst [vmem:[#allocation8 + $0x258] sm:$0xff] %v1632_v53  ;;  %v1636_v8 = vadd.f32 %v1635_v55, %v1378_v54  ;;  %v1380_v9 = vpop.f32.mrf.mxu0 }
 0x1ed   :  { %v1637_v10 = vpop.f32.mrf.mxu1 }
 0x1ee   :  { %2177 = vst [vmem:[#allocation8 + $0x270] sm:$0xff] %v1636_v8  ;;  %v1638_v11 = vadd.f32 %v1637_v10, %v1380_v9  ;;  %v1384_v16 = vpop.f32.mrf.mxu0 }
 0x1ef   :  { %v1641_v17 = vpop.f32.mrf.mxu1 }
 0x1f0   :  { %2178 = vst [vmem:[#allocation8 + $0x278] sm:$0xff] %v1638_v11  ;;  %v1642_v18 = vadd.f32 %v1641_v17, %v1384_v16  ;;  %v1386_v19 = vpop.f32.mrf.mxu0 }
 0x1f1   :  { %v1643_v24 = vpop.f32.mrf.mxu1 }
 0x1f2   :  { %2181 = vst [vmem:[#allocation8 + $0x290] sm:$0xff] %v1642_v18  ;;  %v1644_v25 = vadd.f32 %v1643_v24, %v1386_v19  ;;  %v1390_v26 = vpop.f32.mrf.mxu0 }
 0x1f3   :  { %v1647_v27 = vpop.f32.mrf.mxu1 }
 0x1f4   :  { %2182 = vst [vmem:[#allocation8 + $0x298] sm:$0xff] %v1644_v25  ;;  %v1648_v32 = vadd.f32 %v1647_v27, %v1390_v26  ;;  %v1392_v33 = vpop.f32.mrf.mxu0 }
 0x1f5   :  { %v1649_v34 = vpop.f32.mrf.mxu1 }
 0x1f6   :  { %2185 = vst [vmem:[#allocation8 + $0x2b0] sm:$0xff] %v1648_v32  ;;  %v1650_v35 = vadd.f32 %v1649_v34, %v1392_v33  ;;  %v1396_v40 = vpop.f32.mrf.mxu0 }
 0x1f7   :  { %v1653_v41 = vpop.f32.mrf.mxu1 }
 0x1f8   :  { %2186 = vst [vmem:[#allocation8 + $0x2b8] sm:$0xff] %v1650_v35  ;;  %v1654_v42 = vadd.f32 %v1653_v41, %v1396_v40  ;;  %v1398_v43 = vpop.f32.mrf.mxu0 }
 0x1f9   :  { %v1655_v48 = vpop.f32.mrf.mxu1 }
 0x1fa   :  { %2189 = vst [vmem:[#allocation8 + $0x2d0] sm:$0xff] %v1654_v42  ;;  %v1656_v49 = vadd.f32 %v1655_v48, %v1398_v43  ;;  %v1402_v50 = vpop.f32.mrf.mxu0 }
 0x1fb   :  { %v1659_v51 = vpop.f32.mrf.mxu1 }
 0x1fc   :  { %2190 = vst [vmem:[#allocation8 + $0x2d8] sm:$0xff] %v1656_v49  ;;  %v1660_v56 = vadd.f32 %v1659_v51, %v1402_v50  ;;  %v1404_v57 = vpop.f32.mrf.mxu0 }
 0x1fd   :  { %v1661_v58 = vpop.f32.mrf.mxu1 }
 0x1fe   :  { %2193 = vst [vmem:[#allocation8 + $0x2f0] sm:$0xff] %v1660_v56  ;;  %v1662_v59 = vadd.f32 %v1661_v58, %v1404_v57  ;;  %v1408_v0 = vpop.f32.mrf.mxu0 }
 0x1ff   :  { %v1665_v1 = vpop.f32.mrf.mxu1 }
 0x200   :  { %2194 = vst [vmem:[#allocation8 + $0x2f8] sm:$0xff] %v1662_v59  ;;  %v1666_v2 = vadd.f32 %v1665_v1, %v1408_v0  ;;  %v1410_v3 = vpop.f32.mrf.mxu0 }
 0x201   :  { %v1667_v12 = vpop.f32.mrf.mxu1 }
 0x202   :  { %2197 = vst [vmem:[#allocation8 + $0x310] sm:$0xff] %v1666_v2  ;;  %v1668_v13 = vadd.f32 %v1667_v12, %v1410_v3  ;;  %v1414_v14 = vpop.f32.mrf.mxu0 }
 0x203   :  { %v1671_v15 = vpop.f32.mrf.mxu1 }
 0x204   :  { %2198 = vst [vmem:[#allocation8 + $0x318] sm:$0xff] %v1668_v13  ;;  %v1672_v28 = vadd.f32 %v1671_v15, %v1414_v14  ;;  %v1416_v29 = vpop.f32.mrf.mxu0 }
 0x205   :  { %v1673_v30 = vpop.f32.mrf.mxu1 }
 0x206   :  { %2201 = vst [vmem:[#allocation8 + $0x330] sm:$0xff] %v1672_v28  ;;  %v1674_v31 = vadd.f32 %v1673_v30, %v1416_v29  ;;  %v1420_v44 = vpop.f32.mrf.mxu0 }
 0x207   :  { %v1677_v45 = vpop.f32.mrf.mxu1 }
 0x208   :  { %2202 = vst [vmem:[#allocation8 + $0x338] sm:$0xff] %v1674_v31  ;;  %v1678_v46 = vadd.f32 %v1677_v45, %v1420_v44  ;;  %v1422_v47 = vpop.f32.mrf.mxu0 }
 0x209   :  { %v1679_v60 = vpop.f32.mrf.mxu1 }
 0x20a   :  { %2205 = vst [vmem:[#allocation8 + $0x350] sm:$0xff] %v1678_v46  ;;  %v1680_v4 = vadd.f32 %v1679_v60, %v1422_v47  ;;  %v1426_v5 = vpop.f32.mrf.mxu0 }
 0x20b   :  { %v1683_v61 = vpop.f32.mrf.mxu1 }
 0x20c   :  { %2206 = vst [vmem:[#allocation8 + $0x358] sm:$0xff] %v1680_v4  ;;  %v1684_v62 = vadd.f32 %v1683_v61, %v1426_v5  ;;  %v1428_v63 = vpop.f32.mrf.mxu0 }
 0x20d   :  { %v1685_v20 = vpop.f32.mrf.mxu1 }
 0x20e   :  { %2209 = vst [vmem:[#allocation8 + $0x370] sm:$0xff] %v1684_v62  ;;  %v1686_v21 = vadd.f32 %v1685_v20, %v1428_v63  ;;  %v1432_v6 = vpop.f32.mrf.mxu0 }
 0x20f   :  { %v1689_v22 = vpop.f32.mrf.mxu1 }
 0x210   :  { %2210 = vst [vmem:[#allocation8 + $0x378] sm:$0xff] %v1686_v21  ;;  %v1690_v7 = vadd.f32 %v1689_v22, %v1432_v6  ;;  %v1434_v23 = vpop.f32.mrf.mxu0 }
 0x211   :  { %v1691_v36 = vpop.f32.mrf.mxu1 }
 0x212   :  { %2213 = vst [vmem:[#allocation8 + $0x390] sm:$0xff] %v1690_v7  ;;  %v1692_v37 = vadd.f32 %v1691_v36, %v1434_v23  ;;  %v1438_v38 = vpop.f32.mrf.mxu0 }
 0x213   :  { %v1695_v39 = vpop.f32.mrf.mxu1 }
 0x214   :  { %2214 = vst [vmem:[#allocation8 + $0x398] sm:$0xff] %v1692_v37  ;;  %v1696_v52 = vadd.f32 %v1695_v39, %v1438_v38  ;;  %v1440_v53 = vpop.f32.mrf.mxu0 }
 0x215   :  { %v1697_v54 = vpop.f32.mrf.mxu1 }
 0x216   :  { %2217 = vst [vmem:[#allocation8 + $0x3b0] sm:$0xff] %v1696_v52  ;;  %v1698_v55 = vadd.f32 %v1697_v54, %v1440_v53  ;;  %v1444_v8 = vpop.f32.mrf.mxu0 }
 0x217   :  { %v1701_v9 = vpop.f32.mrf.mxu1 }
 0x218   :  { %2218 = vst [vmem:[#allocation8 + $0x3b8] sm:$0xff] %v1698_v55  ;;  %v1702_v10 = vadd.f32 %v1701_v9, %v1444_v8  ;;  %v1446_v11 = vpop.f32.mrf.mxu0 }
 0x219   :  { %v1703_v16 = vpop.f32.mrf.mxu1 }
 0x21a   :  { %2221 = vst [vmem:[#allocation8 + $0x3d0] sm:$0xff] %v1702_v10  ;;  %v1704_v17 = vadd.f32 %v1703_v16, %v1446_v11  ;;  %v1450_v18 = vpop.f32.mrf.mxu0 }
 0x21b   :  { %v1707_v19 = vpop.f32.mrf.mxu1 }
 0x21c   :  { %2222 = vst [vmem:[#allocation8 + $0x3d8] sm:$0xff] %v1704_v17  ;;  %v1708_v24 = vadd.f32 %v1707_v19, %v1450_v18  ;;  %v1452_v25 = vpop.f32.mrf.mxu0 }
 0x21d   :  { %v1709_v26 = vpop.f32.mrf.mxu1 }
 0x21e   :  { %2225 = vst [vmem:[#allocation8 + $0x3f0] sm:$0xff] %v1708_v24  ;;  %v1710_v27 = vadd.f32 %v1709_v26, %v1452_v25 }
 0x220   :  { %2226 = vst [vmem:[#allocation8 + $0x3f8] sm:$0xff] %v1710_v27 }
 0x221   :  { %2305 = shalt.err (!%p2302_p0)
}
 0x222   :  { %2238 = dma.vmem_to_hbm [thread:$0]  %s2233_s1, 16384, %s2856_s2, [#allocation5], %s2321_s12, %s2321_s12, %s2322_s13  }
 0x223   :  { %2318 = dma.done.wait [#allocation5], 16384  }
 0x224   :  { %2319 = vsyncadd [#allocation5], 4294950912 }
 0x225   :  { %2242 = vsyncpa [#allocation4], 1 }
 0x226   :  { %2243 = vsyncpa [#allocation7], 1 }
 0x227   :  { %2244 = vsyncpa [#allocation5], 1 }

</bundles_post_ra>
